<compile_context>
chip_gen: v6e
topology: v6e:2x2x1
jax: 0.10.0
libtpu: 0.0.40
codegen_flags: <defaults>
</compile_context>

<pallas_src>
import functools

import jax
import jax.numpy as jnp
import numpy as np
from jax import lax
from jax.experimental import pallas as pl
from jax.experimental.pallas import tpu as pltpu


# ---------------------------------------------------------------------------
# Pallas kernel: build (K, tt) frame matrix in VMEM (time on lanes), one MXU
# matmul, f32 bias+ReLU epilogue, bf16 channel-major lane-dense store.
# ---------------------------------------------------------------------------
def _enc_kernel(win_ref, wt_ref, b_ref, out_ref, fr_ref, *, tt, hop, n_sub):
    """One (batch b, time-tile j) grid step.

    win_ref: (1, 1, hop, tt + n_sub) bf16  time-major signal window;
             win[m, r] = x[(j*tt + r)*hop + m]
    wt_ref : (NPAD, K) bf16  packed + transposed conv weights (K = n_sub*hop)
    b_ref  : (NPAD, 1) f32   packed bias
    out_ref: (1, NPAD, tt) bf16  channel-major output tile (time on 128 lanes)
    fr_ref : (K, tt) bf16 VMEM scratch — frame matrix, time on lanes
    """
    # fr[s*hop + m, t] = win[m, t + s] = x[(j*tt + t)*hop + s*hop + m]
    # Each copy stores a full-lane-width (hop, tt) row block; the shift by s is
    # a static lane-axis slice (XLU shift, off the VALU/store critical path).
    for s in range(n_sub):
        fr_ref[s * hop:(s + 1) * hop, :] = win_ref[0, 0, :, s:s + tt]

    # Natural (NPAD, K) x (K, tt) MXU matmul, f32 accumulation — result is
    # already channel-major with time on lanes, so the store is unmasked.
    acc = jnp.dot(wt_ref[...], fr_ref[...], preferred_element_type=jnp.float32)
    out_ref[0, :, :] = jnp.maximum(acc + b_ref[...], 0.0).astype(out_ref.dtype)


# ---------------------------------------------------------------------------
# SpeechEncoder forward (wrapper: weight packing + window building is glue JAX)
# ---------------------------------------------------------------------------
def speech_encoder_forward(x, params, *, l1, l2, l3, tt=1024):
    """x: (B, 1, T) float32.  Returns (out_short, out_middle, out_long),
    each (B, C, T_out) bfloat16, matching the PyTorch module's forward."""
    assert tt % 128 == 0, "tt must be a multiple of 128 (lane-dense output)"
    assert l1 <= l2 <= l3, "SpEx+ expects L1 <= L2 <= L3"
    w1, b1 = params["w1"], params["b1"]   # (L1, C), (C,)
    w2, b2 = params["w2"], params["b2"]   # (L2, C), (C,)
    w3, b3 = params["w3"], params["b3"]   # (L3, C), (C,)
    C = w1.shape[1]

    B, _, x_len1 = x.shape
    hop = l1 // 2
    t_out = (x_len1 - l1) // hop + 1       # frames produced by the short conv
    n_sub = -(-l3 // hop)                  # ceil(L3 / hop) shifted rows per frame
    k_taps = n_sub * hop                   # padded tap count (>= L3)
    n_tiles = -(-t_out // tt)
    n_out = 3 * C
    n_pad = -(-n_out // 16) * 16           # channels: bf16 sublane alignment only
    s_rows = tt + n_sub

    # --- pack the three convs into one transposed bf16 weight matrix (tiny) --
    w1p = jnp.pad(w1, ((0, k_taps - l1), (0, 0)))
    w2p = jnp.pad(w2, ((0, k_taps - l2), (0, 0)))
    w3p = jnp.pad(w3, ((0, k_taps - l3), (0, 0)))
    w_all = jnp.concatenate([w1p, w2p, w3p], axis=1)                  # (K, 3C)
    w_t = jnp.pad(w_all.T, ((0, n_pad - n_out), (0, 0))).astype(jnp.bfloat16)
    b_col = jnp.pad(jnp.concatenate([b1, b2, b3]),
                    (0, n_pad - n_out)).reshape(n_pad, 1)             # (NPAD,1) f32

    # --- signal -> per-tile overlapping windows, TIME-MAJOR on the lane axis.
    #     ~1.03x input bytes in HBM; the n_sub-fold frame duplication happens
    #     only inside VMEM.
    n_rows = n_tiles * tt + n_sub
    x_pad = jnp.pad(x[:, 0, :], ((0, 0), (0, n_rows * hop - x_len1)))
    x2d = x_pad.reshape(B, n_rows, hop)
    row_idx = (jnp.arange(n_tiles)[:, None] * tt
               + jnp.arange(s_rows)[None, :])                         # (nt, s_rows)
    windows = jnp.take(x2d, row_idx, axis=1)                          # (B, nt, s_rows, hop)
    windows = jnp.swapaxes(windows, 2, 3).astype(jnp.bfloat16)        # (B, nt, hop, s_rows)
    # TODO(synk): the gather+transpose is an extra HBM pass over the (small)
    # input; replace with an element-offset BlockSpec / manual DMA from an
    # ANY-space ref only after the output side stops being the bottleneck.

    kernel = functools.partial(_enc_kernel, tt=tt, hop=hop, n_sub=n_sub)
    out_elems = B * n_pad * n_tiles * tt
    flops = 2 * out_elems * k_taps
    bytes_accessed = (2 * windows.size + 2 * w_t.size + 4 * b_col.size
                      + 2 * out_elems)

    out_all = pl.pallas_call(
        kernel,
        out_shape=jax.ShapeDtypeStruct((B, n_pad, n_tiles * tt), jnp.bfloat16),
        grid=(B, n_tiles),
        in_specs=[
            pl.BlockSpec((1, 1, hop, s_rows), lambda b, j: (b, j, 0, 0)),
            # Weights / bias are grid-invariant and tiny; they stay resident.
            # TODO(synk): pipeline_mode=pl.Buffered(1) would drop their second
            # pipeline buffer (~0.25 MiB at C=256) if VMEM headroom is needed.
            pl.BlockSpec((n_pad, k_taps), lambda b, j: (0, 0)),
            pl.BlockSpec((n_pad, 1), lambda b, j: (0, 0)),
        ],
        out_specs=pl.BlockSpec((1, n_pad, tt), lambda b, j: (b, 0, j)),
        scratch_shapes=[pltpu.VMEM((k_taps, tt), jnp.bfloat16)],
        compiler_params=pltpu.CompilerParams(
            # TODO(synk): on v7x use CORE_PARALLEL on the leading grid axis to
            # engage both TensorCores; for tt >= 4096 at C=256 also set
            # vmem_limit_bytes explicitly (v7x has 64 MiB VMEM per TC).
            dimension_semantics=("parallel", "parallel")),
        cost_estimate=pl.CostEstimate(
            flops=flops, transcendentals=0, bytes_accessed=bytes_accessed),
    )(windows, w_t, b_col)

    # Channel-major slices only (no transposes); padded channels/time trimmed.
    out_short = out_all[:, 0 * C:1 * C, :t_out]
    out_middle = out_all[:, 1 * C:2 * C, :t_out]
    out_long = out_all[:, 2 * C:3 * C, :t_out]
    return out_short, out_middle, out_long


# ---------------------------------------------------------------------------
# Deterministic parameter init (shapes match nn.Conv1d(1, C, L) weights/bias)
# ---------------------------------------------------------------------------
def init_params(key, C, l1, l2, l3):
    ks = jax.random.split(key, 6)

    def conv_init(kw, kb, L):
        bound = 1.0 / np.sqrt(L)  # PyTorch Conv1d default: U(-1/sqrt(fan_in), +)
        w = jax.random.uniform(kw, (L, C), jnp.float32, -bound, bound)
        b = jax.random.uniform(kb, (C,), jnp.float32, -bound, bound)
        return w, b

    w1, b1 = conv_init(ks[0], ks[1], l1)
    w2, b2 = conv_init(ks[2], ks[3], l2)
    w3, b3 = conv_init(ks[4], ks[5], l3)
    return dict(w1=w1, b1=b1, w2=w2, b2=b2, w3=w3, b3=b3)


# ---------------------------------------------------------------------------
# Reference (pure JAX f32 convs) for verification
# ---------------------------------------------------------------------------
def reference_forward(x, params, *, l1, l2, l3):
    hop = l1 // 2

    def conv1d(inp, w, b):  # inp: (B, 1, T), w: (L, C) -> (B, C, T_out)
        w_oik = jnp.transpose(w, (1, 0))[:, None, :]  # (C, 1, L)
        y = lax.conv_general_dilated(
            inp, w_oik, window_strides=(hop,), padding="VALID",
            dimension_numbers=("NCH", "OIH", "NCH"))
        return jnp.maximum(y + b[None, :, None], 0.0)

    out_s = conv1d(x, params["w1"], params["b1"])
    t_out = out_s.shape[-1]
    x_len1 = x.shape[-1]
    x_len2 = (t_out - 1) * hop + l2
    x_len3 = (t_out - 1) * hop + l3
    x2 = jnp.pad(x, ((0, 0), (0, 0), (0, x_len2 - x_len1)))
    x3 = jnp.pad(x, ((0, 0), (0, 0), (0, x_len3 - x_len1)))
    out_m = conv1d(x2, params["w2"], params["b2"])
    out_l = conv1d(x3, params["w3"], params["b3"])
    return out_s, out_m, out_l


if __name__ == "__main__":
    # Small but multi-tile shapes: B=2, 1 input channel, T=8192 samples,
    # L1=4, L2=8, L3=16, C=32 output channels, stride = L1//2 = 2.
    # -> T_out = 4095, tile tt=1024, grid = (2 batches, 4 time tiles).
    B, T = 2, 8192
    L1, L2, L3, C = 4, 8, 16, 32

    key = jax.random.PRNGKey(0)
    kx, kp = jax.random.split(key)
    x = jax.random.normal(kx, (B, 1, T), jnp.float32)
    params = init_params(kp, C, L1, L2, L3)

    fwd = jax.jit(functools.partial(
        speech_encoder_forward, l1=L1, l2=L2, l3=L3, tt=1024))
    out_short, out_middle, out_long = fwd(x, params)
    jax.block_until_ready((out_short, out_middle, out_long))

    # Verify against a pure-JAX f32 conv reference.  Tolerance accommodates the
    # bf16 input/weight/output quantization (accumulation + epilogue stay f32);
    # a real indexing bug would produce O(1) errors, far above 3e-2.
    ref_s, ref_m, ref_l = reference_forward(x, params, l1=L1, l2=L2, l3=L3)

    def _f32(a):
        return np.asarray(a.astype(jnp.float32))

    np.testing.assert_allclose(_f32(out_short), np.asarray(ref_s), atol=3e-2, rtol=3e-2)
    np.testing.assert_allclose(_f32(out_middle), np.asarray(ref_m), atol=3e-2, rtol=3e-2)
    np.testing.assert_allclose(_f32(out_long), np.asarray(ref_l), atol=3e-2, rtol=3e-2)

    print("KERNEL_OK")
</pallas_src>

<mosaic_0001>
module attributes {stable_mosaic.version = 11 : i64} {
  func.func @_enc_kernel(%arg0: i32, %arg1: i32, %arg2: memref<1x1x2x1032xbf16, #tpu.memory_space<vmem>>, %arg3: memref<96x16xbf16, #tpu.memory_space<vmem>>, %arg4: memref<96x1xf32, #tpu.memory_space<vmem>>, %arg5: memref<1x96x1024xbf16, #tpu.memory_space<vmem>>, %arg6: memref<16x1024xbf16, #tpu.memory_space<vmem>>) attributes {dimension_semantics = [#tpu.dimension_semantics<parallel>, #tpu.dimension_semantics<parallel>], iteration_bounds = array<i64: 2, 4>, scalar_prefetch = 0 : i64, scratch_operands = 1 : i64, tpu.core_type = #tpu.core_type<tc>, window_params = [{transform_indices = @transform_0, window_bounds = array<i64: 1, 1, 2, 1032>}, {pipeline_mode = #tpu.pipeline_mode<synchronous>, transform_indices = @transform_1, window_bounds = array<i64: 96, 16>}, {pipeline_mode = #tpu.pipeline_mode<synchronous>, transform_indices = @transform_2, window_bounds = array<i64: 96, 1>}, {transform_indices = @transform_3, window_bounds = array<i64: 1, 96, 1024>}]} {
    %c0 = arith.constant 0 : index
    %c0_0 = arith.constant 0 : index
    %c0_1 = arith.constant 0 : index
    %c0_2 = arith.constant 0 : index
    %0 = vector.load %arg2[%c0, %c0_0, %c0_1, %c0_2] : memref<1x1x2x1032xbf16, #tpu.memory_space<vmem>>, vector<1x1x2x1024xbf16>
    %1 = vector.shape_cast %0 : vector<1x1x2x1024xbf16> to vector<2x1024xbf16>
    %c0_3 = arith.constant 0 : index
    %c0_4 = arith.constant 0 : index
    %2 = vector.load %arg6[%c0_3, %c0_4] : memref<16x1024xbf16, #tpu.memory_space<vmem>>, vector<2x1024xbf16>
    tpu.vector_store %arg6[%c0_3, %c0_4], %1 {strides = array<i32>} : memref<16x1024xbf16, #tpu.memory_space<vmem>>, vector<2x1024xbf16>,
    %c0_5 = arith.constant 0 : index
    %c0_6 = arith.constant 0 : index
    %c0_7 = arith.constant 0 : index
    %c1 = arith.constant 1 : index
    %3 = vector.load %arg2[%c0_5, %c0_6, %c0_7, %c1] : memref<1x1x2x1032xbf16, #tpu.memory_space<vmem>>, vector<1x1x2x1024xbf16>
    %4 = vector.shape_cast %3 : vector<1x1x2x1024xbf16> to vector<2x1024xbf16>
    %c2 = arith.constant 2 : index
    %c0_8 = arith.constant 0 : index
    %5 = vector.load %arg6[%c2, %c0_8] : memref<16x1024xbf16, #tpu.memory_space<vmem>>, vector<2x1024xbf16>
    tpu.vector_store %arg6[%c2, %c0_8], %4 {strides = array<i32>} : memref<16x1024xbf16, #tpu.memory_space<vmem>>, vector<2x1024xbf16>,
    %c0_9 = arith.constant 0 : index
    %c0_10 = arith.constant 0 : index
    %c0_11 = arith.constant 0 : index
    %c2_12 = arith.constant 2 : index
    %6 = vector.load %arg2[%c0_9, %c0_10, %c0_11, %c2_12] : memref<1x1x2x1032xbf16, #tpu.memory_space<vmem>>, vector<1x1x2x1024xbf16>
    %7 = vector.shape_cast %6 : vector<1x1x2x1024xbf16> to vector<2x1024xbf16>
    %c4 = arith.constant 4 : index
    %c0_13 = arith.constant 0 : index
    %8 = vector.load %arg6[%c4, %c0_13] : memref<16x1024xbf16, #tpu.memory_space<vmem>>, vector<2x1024xbf16>
    tpu.vector_store %arg6[%c4, %c0_13], %7 {strides = array<i32>} : memref<16x1024xbf16, #tpu.memory_space<vmem>>, vector<2x1024xbf16>,
    %c0_14 = arith.constant 0 : index
    %c0_15 = arith.constant 0 : index
    %c0_16 = arith.constant 0 : index
    %c3 = arith.constant 3 : index
    %9 = vector.load %arg2[%c0_14, %c0_15, %c0_16, %c3] : memref<1x1x2x1032xbf16, #tpu.memory_space<vmem>>, vector<1x1x2x1024xbf16>
    %10 = vector.shape_cast %9 : vector<1x1x2x1024xbf16> to vector<2x1024xbf16>
    %c6 = arith.constant 6 : index
    %c0_17 = arith.constant 0 : index
    %11 = vector.load %arg6[%c6, %c0_17] : memref<16x1024xbf16, #tpu.memory_space<vmem>>, vector<2x1024xbf16>
    tpu.vector_store %arg6[%c6, %c0_17], %10 {strides = array<i32>} : memref<16x1024xbf16, #tpu.memory_space<vmem>>, vector<2x1024xbf16>,
    %c0_18 = arith.constant 0 : index
    %c0_19 = arith.constant 0 : index
    %c0_20 = arith.constant 0 : index
    %c4_21 = arith.constant 4 : index
    %12 = vector.load %arg2[%c0_18, %c0_19, %c0_20, %c4_21] : memref<1x1x2x1032xbf16, #tpu.memory_space<vmem>>, vector<1x1x2x1024xbf16>
    %13 = vector.shape_cast %12 : vector<1x1x2x1024xbf16> to vector<2x1024xbf16>
    %c8 = arith.constant 8 : index
    %c0_22 = arith.constant 0 : index
    %14 = vector.load %arg6[%c8, %c0_22] : memref<16x1024xbf16, #tpu.memory_space<vmem>>, vector<2x1024xbf16>
    tpu.vector_store %arg6[%c8, %c0_22], %13 {strides = array<i32>} : memref<16x1024xbf16, #tpu.memory_space<vmem>>, vector<2x1024xbf16>,
    %c0_23 = arith.constant 0 : index
    %c0_24 = arith.constant 0 : index
    %c0_25 = arith.constant 0 : index
    %c5 = arith.constant 5 : index
    %15 = vector.load %arg2[%c0_23, %c0_24, %c0_25, %c5] : memref<1x1x2x1032xbf16, #tpu.memory_space<vmem>>, vector<1x1x2x1024xbf16>
    %16 = vector.shape_cast %15 : vector<1x1x2x1024xbf16> to vector<2x1024xbf16>
    %c10 = arith.constant 10 : index
    %c0_26 = arith.constant 0 : index
    %17 = vector.load %arg6[%c10, %c0_26] : memref<16x1024xbf16, #tpu.memory_space<vmem>>, vector<2x1024xbf16>
    tpu.vector_store %arg6[%c10, %c0_26], %16 {strides = array<i32>} : memref<16x1024xbf16, #tpu.memory_space<vmem>>, vector<2x1024xbf16>,
    %c0_27 = arith.constant 0 : index
    %c0_28 = arith.constant 0 : index
    %c0_29 = arith.constant 0 : index
    %c6_30 = arith.constant 6 : index
    %18 = vector.load %arg2[%c0_27, %c0_28, %c0_29, %c6_30] : memref<1x1x2x1032xbf16, #tpu.memory_space<vmem>>, vector<1x1x2x1024xbf16>
    %19 = vector.shape_cast %18 : vector<1x1x2x1024xbf16> to vector<2x1024xbf16>
    %c12 = arith.constant 12 : index
    %c0_31 = arith.constant 0 : index
    %20 = vector.load %arg6[%c12, %c0_31] : memref<16x1024xbf16, #tpu.memory_space<vmem>>, vector<2x1024xbf16>
    tpu.vector_store %arg6[%c12, %c0_31], %19 {strides = array<i32>} : memref<16x1024xbf16, #tpu.memory_space<vmem>>, vector<2x1024xbf16>,
    %c0_32 = arith.constant 0 : index
    %c0_33 = arith.constant 0 : index
    %c0_34 = arith.constant 0 : index
    %c7 = arith.constant 7 : index
    %21 = vector.load %arg2[%c0_32, %c0_33, %c0_34, %c7] : memref<1x1x2x1032xbf16, #tpu.memory_space<vmem>>, vector<1x1x2x1024xbf16>
    %22 = vector.shape_cast %21 : vector<1x1x2x1024xbf16> to vector<2x1024xbf16>
    %c14 = arith.constant 14 : index
    %c0_35 = arith.constant 0 : index
    %23 = vector.load %arg6[%c14, %c0_35] : memref<16x1024xbf16, #tpu.memory_space<vmem>>, vector<2x1024xbf16>
    tpu.vector_store %arg6[%c14, %c0_35], %22 {strides = array<i32>} : memref<16x1024xbf16, #tpu.memory_space<vmem>>, vector<2x1024xbf16>,
    %c0_36 = arith.constant 0 : index
    %c0_37 = arith.constant 0 : index
    %24 = vector.load %arg3[%c0_36, %c0_37] : memref<96x16xbf16, #tpu.memory_space<vmem>>, vector<96x16xbf16>
    %c0_38 = arith.constant 0 : index
    %c0_39 = arith.constant 0 : index
    %25 = vector.load %arg6[%c0_38, %c0_39] : memref<16x1024xbf16, #tpu.memory_space<vmem>>, vector<16x1024xbf16>
    %cst = arith.constant dense<0.000000e+00> : vector<96x1024xf32>
    %26 = tpu.matmul %24, %25, %cst {dimension_numbers = #tpu.dot_dimension_numbers<[1], [0], [0], [1], [0, 0, 1, 1], [], []>} : vector<96x16xbf16>, vector<16x1024xbf16>, vector<96x1024xf32> -> vector<96x1024xf32>
    %c0_40 = arith.constant 0 : index
    %c0_41 = arith.constant 0 : index
    %27 = vector.load %arg4[%c0_40, %c0_41] : memref<96x1xf32, #tpu.memory_space<vmem>>, vector<96x1xf32>
    %28 = vector.broadcast %27 : vector<96x1xf32> to vector<96x1024xf32>
    %29 = arith.addf %26, %28 : vector<96x1024xf32>
    %cst_42 = arith.constant 0.000000e+00 : f32
    %30 = vector.broadcast %cst_42 : f32 to vector<96x1024xf32>
    %31 = arith.maximumf %29, %30 : vector<96x1024xf32>
    %32 = arith.truncf %31 : vector<96x1024xf32> to vector<96x1024xbf16>
    %c0_43 = arith.constant 0 : index
    %c0_44 = arith.constant 0 : index
    %c0_45 = arith.constant 0 : index
    %33 = vector.load %arg5[%c0_43, %c0_44, %c0_45] : memref<1x96x1024xbf16, #tpu.memory_space<vmem>>, vector<1x96x1024xbf16>
    %34 = vector.shape_cast %33 : vector<1x96x1024xbf16> to vector<96x1024xbf16>
    %35 = vector.shape_cast %32 : vector<96x1024xbf16> to vector<1x96x1024xbf16>
    tpu.vector_store %arg5[%c0_43, %c0_44, %c0_45], %35 {strides = array<i32>} : memref<1x96x1024xbf16, #tpu.memory_space<vmem>>, vector<1x96x1024xbf16>,
    return
  }
  func.func @transform_0(%arg0: i32, %arg1: i32) -> (i32, i32, i32, i32) {
    %c0_i32 = arith.constant 0 : i32
    %c0_i32_0 = arith.constant 0 : i32
    %c0_i32_1 = arith.constant 0 : i32
    return %arg0, %arg1, %c0_i32, %c0_i32_0 : i32, i32, i32, i32
  }
  func.func @transform_1(%arg0: i32, %arg1: i32) -> (i32, i32) {
    %c0_i32 = arith.constant 0 : i32
    %c0_i32_0 = arith.constant 0 : i32
    %c0_i32_1 = arith.constant 0 : i32
    return %c0_i32, %c0_i32_0 : i32, i32
  }
  func.func @transform_2(%arg0: i32, %arg1: i32) -> (i32, i32) {
    %c0_i32 = arith.constant 0 : i32
    %c0_i32_0 = arith.constant 0 : i32
    %c0_i32_1 = arith.constant 0 : i32
    return %c0_i32, %c0_i32_0 : i32, i32
  }
  func.func @transform_3(%arg0: i32, %arg1: i32) -> (i32, i32, i32) {
    %c0_i32 = arith.constant 0 : i32
    %c0_i32_0 = arith.constant 0 : i32
    return %arg0, %c0_i32, %arg1 : i32, i32, i32
  }
}

</mosaic_0001>

<bundles_post_ra>
// kernel: speech_encoder_forward.1
= control target key start
LH: loop header
LB: loop body
LE: loop exit
PB: predicated region body
PF: predicated region fallthrough
CT: control target
= control target key end

     0   :  { %s2418_s12 = smov 0   ;;  %s2420_s13 = smov 0   ;;  %s3093_s0 = inlined_call_operand.vmem [shape: bf16[2,4,2,1032], index: 0, kind: input, shape index: {}]   ;;  %s3094_s1 = inlined_call_operand.vmem [shape: bf16[96,16], index: 1, kind: input, shape index: {}]   ;;  %s3095_s2 = inlined_call_operand.vmem [shape: f32[96,1], index: 2, kind: input, shape index: {}]   ;;  %s3096_s3 = inlined_call_operand.vmem [shape: bf16[2,96,4096], index: 3, kind: output, shape index: {}]  }
   0x1   :  { %s2422_s14 = smov 0   ;;  %s2424_s15 = smov 0  }
   0x2   :  { %s2426_s16 = smov 0   ;;  %s2428_s17 = smov 0  }
   0x3   :  { %s2430_s18 = smov 0  }
   0x4 LB: > { %s22_s19 = sadd.s32 1, %s2379_s16  ;;  %s25_s20 = sadd.s32 1, %s2383_s17  ;;  %s2387_s18 = sphi %s2430_s18, %s13_s18   ;;  %s2383_s17 = sphi %s2428_s17, %s3103_s17   ;;  %s2379_s16 = sphi %s2426_s16, %s3102_s16   ;;  %s2375_s15 = sphi %s2424_s15, %s3101_s15   ;;  %s2371_s14 = sphi %s2422_s14, %s3100_s14   ;;  %s2367_s13 = sphi %s2420_s13, %s3099_s13   ;;  %s2363_s12 = sphi %s2418_s12, %s3098_s12  }
   0x5   : > { %p23_p0 = scmp.ge.s32.totalorder %s22_s19, 4  ;;  %s2100_s21 = sadd.s32 4294967295, %s2387_s18  }
   0x6   : > { %p114_p1 = scmp.ne.s32.totalorder %s2367_s13, %s2363_s12  ;;  %p115_p2 = scmp.eq.s32.totalorder %s2100_s21, 7 }
   0x7   : > { %s3105_s19 = smov (%p23_p0, %s22_s19), 0  ;;  %s3107_s20 = smov (!%p23_p0, %s25_s20), %s2383_s17 }
   0x8   : > { %s100_s22 = ssub.s32 %s2379_s16, %s3105_s19  ;;  %p27_p3 = scmp.ge.s32.totalorder %s3107_s20, 2 }
   0x9   : > { %p2104_p4 = scmp.ge.s32.totalorder %s2387_s18, 1  ;;  %p2464_p5 = por %p115_p2, %p114_p1 }
   0xa   : > { %p156_p6 = scmp.lt.s32.totalorder %s2387_s18, 9  ;;  %s3109_s20 = smov (%p27_p3, %s3107_s20), 0 }
   0xb   : > { %s99_s24 = ssub.s32 %s2383_s17, %s3109_s20  ;;  %s104_s26 = sadd.s32 1, %s2367_s13 }
   0xc   : > { %p157_p7 = pnand %p2104_p4, %p156_p6  ;;  %s101_s25 = sor.u32 %s100_s22, %s99_s24 }
   0xd   : > { %p102_p8 = scmp.eq.s32.totalorder %s101_s25, 0  ;;  %p182_p9 = scmp.lt.s32.totalorder (!%p157_p7), %s2375_s15, 1 }
   0xe   : > { %160 = sbr.rel (%p157_p7) target bundleno = 508 (0x1fc), region = 32  ;;  %p184_p10 = scmp.lt.s32.totalorder (!%p157_p7), %s2371_s14, 3 }
   0xf   : > { %s2475_s27 = scalar_select %p102_p8, %s2367_s13, %s104_s26  }
  0x10   : > { %s2390_s9 = smov (!%p157_p7), 126   ;;  %s2391_s10 = smov (!%p157_p7), 127  }
  0x11   : > { %s2392_s11 = smov (!%p157_p7), 125   ;;  %s2393_s21 = smov (!%p157_p7), 124  }
  0x12   : > { %s2394_s22 = smov (!%p157_p7), 123   ;;  %s2395_s24 = smov (!%p157_p7), 122  }
  0x13   : > { %v198_v0 = vlaneseq  ;;  %v2389_v1 = vmov 1935823168   ;;  %s183_s28 = scalar_select %p182_p9, %s2375_s15, 1  ;;  %v2397_v36 = vmov 0   ;;  %v942_v46 = vld [vmem:[%s3095_s2 + $0x8] sm:$0xff]  ;;  %v941_v47 = vld [vmem:[%s3095_s2] sm:$0xff] }
  0x14   : > { %v196_v2 = vunpack.c.l.s4 %v2389_v1  ;;  %s185_s29 = scalar_select %p184_p10, %s2371_s14, 3  ;;  %1134 = vmatprep.mubr.bf16.mxu0 %v2397_v36  ;;  %1227 = vmatprep.mubr.bf16.mxu1 %v2397_v36  ;;  %v943_v50 = vld [vmem:[%s3095_s2 + $0x10] sm:$0xff]  ;;  %vm326_vm0 = vcmask 1043456   ;;  %vm328_vm1 = vcmask 1039360   ;;  %v944_v56 = vld [vmem:[%s3095_s2 + $0x18] sm:$0xff]  ;;  %vm521_vm2 = vcmask 1022976  }
  0x15   : > { %v199_v3 = vshrl.u32 %v198_v0, 7  ;;  %s2252_s30 = smul.u32 36, %s183_s28  ;;  %s2396_s25 = smov 121   ;;  %2320 = vset.pattern.permute.xlu0 %v2397_v36  ;;  %2319 = vset.pattern.permute.xlu1 %v2397_v36  ;;  %vm424_vm3 = vcmask 1031168   ;;  %vm616_vm4 = vcmask 1014784   ;;  %vm712_vm5 = vcmask 1006592  }
  0x16   : > { %v197_v4 = vunpack.c.0.s8 %v196_v2  ;;  %s2251_s4 = smul.u32 9, %s185_s29  ;;  %vm808_vm6 = vcmask 998400   ;;  %vm905_vm7 = vcmask 990208   ;;  %vm1083_vm8 = vcmask 130048   ;;  %s2198_s6 = sshll.u32 (%p2464_p5), %s2371_s14, 3 }
  0x17   : > { %s2253_s7 = smul.u32 (%p2464_p5), 384, %s2375_s15 }
  0x18   : > { %v2481_v5 = vsub.s32 %v197_v4, %v199_v3  ;;  %s188_s5 = sadd.s32 %s2252_s30, %s2251_s4  ;;  %s179_s4 = sand.u32 1, %s2363_s12  }
  0x19   : > { %s2486_s8 = scalar_lea.vmem %s3093_s0, %s188_s5  ;;  %s2250_s5 = smul.u32 384, %s179_s4 }
  0x1a   : > { %v344_v6 = vld [vmem:[%s2486_s8] sm:$0xff]  ;;  %v2326_v17 = vld [vmem:[%s2486_s8 + $0x8] ss:$0 sps:$4 sm:$0x11]   ;;  %s1915_s23 = sadd.s32 (%p2464_p5), %s2253_s7, %s2198_s6 }
  0x1b   : > { %v362_v7 = vrot.slane %v344_v6, %v2481_v5  ;;  %v348_v8 = vcombine.low %v344_v6, %v344_v6  ;;  %v251_v9 = vcombine.high %v344_v6, %v344_v6  ;;  %v880_v19 = vrot.slane %v2326_v17, %v2481_v5  ;;  %v2109_v29 = vld.sshfl [vmem:[%s2486_s8 + $0x8] sm:$0x1 pattern:$0x73625140]  ;;  %v947_v17 = vld [vmem:[%s3095_s2 + $0x30] sm:$0xff]  ;;  %s2813_s12 = scalar_lea.vmem [#allocation3], %s2250_s5 }
  0x1c   : > { %v303_v30 = vcombine.low %v2109_v29, %v2109_v29  ;;  %v2323_v31 = vld [vmem:[%s2486_s8 + $0x8] ss:$0 sps:$4 sm:$0x11]   ;;  %v599_v42 = vrot.slane %v2109_v29, %v2481_v5 }
  0x1d   : > { %v2491_v10 = vrot.slane %v362_v7, %v2481_v5  ;;  %v364_v11 = vcombine.high %v362_v7, %v362_v7  ;;  %v2494_v12 = vrot.slane %v251_v9, %v2481_v5  ;;  %v266_v13 = vcombine.low %v362_v7, %v362_v7  ;;  %2105 = vst.sshfl [vmem:[#allocation2] sm:$0x5 pattern:$0x75316420] %v362_v7  ;;  %v945_v7 = vld [vmem:[%s3095_s2 + $0x20] sm:$0xff] }
  0x1e   : > { %v355_v14 = vrot.slane %v348_v8, %v2481_v5  ;;  %v881_v23 = vcombine.low %v880_v19, %v880_v19  ;;  %v2324_v32 = vld [vmem:[%s2486_s8 + $0x8] ss:$0 sps:$4 sm:$0x11]   ;;  %v310_v33 = vrot.slane %v303_v30, %v2481_v5  ;;  %v400_v34 = vrot.slane %v2323_v31, %v2481_v5 }
  0x1f   : > { %412 = vrot.lane.b32.xlu1 %v2491_v10, %s2390_s9  ;;  %313 = vrot.lane.b32.xlu0 %v2491_v10, %s2391_s10  ;;  %v274_v15 = vrot.slane %v266_v13, %v2481_v5  ;;  %2106 = vst.sshfl [vmem:[#allocation2 + $0x8] sm:$0x5 pattern:$0x75316420] %v364_v11  ;;  %v267_v20 = vcombine.low %v2494_v12, %v2494_v12  ;;  %v946_v8 = vld [vmem:[%s3095_s2 + $0x28] sm:$0xff] }
  0x20   : > { %2107 = vst.sshfl [vmem:[#allocation2 + $0x10] sm:$0x5 pattern:$0x75316420] %v2494_v12  ;;  %v371_v16 = vrot.slane %v355_v14, %v2481_v5  ;;  %v363_v18 = vcombine.high %v355_v14, %v355_v14  ;;  %v459_v22 = vcombine.low %v355_v14, %v355_v14  ;;  %v888_v24 = vrot.slane %v881_v23, %v2481_v5 }
  0x21   : > { %v288_v26 = vrot.slane %v267_v20, %v2481_v5  ;;  %v571_v27 = vrot.slane %v364_v11, %v2481_v5  ;;  %v578_v28 = vrot.slane %v2494_v12, %v2481_v5  ;;  %v496_v35 = vrot.slane %v2324_v32, %v2481_v5  ;;  %v2325_v43 = vld [vmem:[%s2486_s8 + $0x8] ss:$0 sps:$4 sm:$0x11]   ;;  %s2199_s8 = sshll.u32 (%p2464_p5), %s1915_s23, 2 }
  0x22   : > { %v378_v21 = vrot.slane %v363_v18, %v2481_v5  ;;  %v467_v25 = vrot.slane %v459_v22, %v2481_v5  ;;  %v407_v37 = vrot.slane %v400_v34, %v2481_v5  ;;  %v557_v39 = vcombine.high %v2494_v12, %v2494_v12  ;;  %v948_v18 = vld [vmem:[%s3095_s2 + $0x38] sm:$0xff]  ;;  %s2986_s15 = scalar_lea.vmem (%p2464_p5), %s3096_s3, %s2199_s8 }
  0x23   : > { %408 = vrot.lane.b32.xlu1 %v371_v16, %s2390_s9  ;;  %311 = vrot.lane.b32.xlu0 %v274_v15, %s2391_s10  ;;  %v497_v38 = vcombine.low %v496_v35, %v496_v35  ;;  %v784_v44 = vrot.slane %v2325_v43, %v2481_v5 }
  0x24   : > { %v585_v41 = vrot.slane %v557_v39, %v2481_v5  ;;  %2108 = vst.sshfl [vmem:[#allocation2 + $0x18] sm:$0x5 pattern:$0x75316420] %v557_v39 }
  0x25   : > { %v504_v40 = vrot.slane %v497_v38, %v2481_v5  ;;  %v791_v45 = vrot.slane %v784_v44, %v2481_v5  ;;  %v952_v38 = vld [vmem:[%s3095_s2 + $0x58] sm:$0xff] }
  0x27   : > { %507 = vrot.lane.b32.xlu1 %v371_v16, %s2392_s11  ;;  %509 = vrot.lane.b32.xlu0 %v274_v15, %s2392_s11 }
  0x2b   : > { %600 = vrot.lane.b32.xlu1 %v2491_v10, %s2393_s21  ;;  %410 = vrot.lane.b32.xlu0 %v378_v21, %s2390_s9 }
  0x2f   : > { %505 = vrot.lane.b32.xlu0 %v467_v25, %s2392_s11  ;;  %315 = vrot.lane.b32.xlu1 %v288_v26, %s2391_s10 }
  0x33   : > { %602 = vrot.lane.b32.xlu0 %v571_v27, %s2393_s21  ;;  %604 = vrot.lane.b32.xlu1 %v578_v28, %s2393_s21 }
  0x37   : > { %696 = vrot.lane.b32.xlu0 %v274_v15, %s2394_s22  ;;  %698 = vrot.lane.b32.xlu1 %v2491_v10, %s2394_s22 }
  0x3b   : > { %700 = vrot.lane.b32.xlu0 %v288_v26, %s2394_s22  ;;  %792 = vrot.lane.b32.xlu1 %v371_v16, %s2395_s24  ;;  %v949_v26 = vld [vmem:[%s3095_s2 + $0x40] sm:$0xff] }
  0x3f   : > { %794 = vrot.lane.b32.xlu0 %v378_v21, %s2395_s24  ;;  %796 = vrot.lane.b32.xlu1 %v2491_v10, %s2395_s24 }
  0x43   : > { %889 = vrot.lane.b32.xlu0 %v467_v25, %s2396_s25  ;;  %891 = vrot.lane.b32.xlu1 %v371_v16, %s2396_s25 }
  0x47   : > { %893 = vrot.lane.b32.xlu0 %v274_v15, %s2396_s25  ;;  %317 = vrot.lane.b32.xlu1 %v578_v28, %s2391_s10 }
  0x4b   : > { %319 = vrot.lane.b32.xlu0 %v310_v33, %s2391_s10  ;;  %414 = vrot.lane.b32.xlu1 %v571_v27, %s2390_s9 }
  0x4f   : > { %416 = vrot.lane.b32.xlu0 %v407_v37, %s2390_s9  ;;  %511 = vrot.lane.b32.xlu1 %v2491_v10, %s2392_s11  ;;  %v951_v37 = vld [vmem:[%s3095_s2 + $0x50] sm:$0xff] }
  0x53   : > { %513 = vrot.lane.b32.xlu0 %v504_v40, %s2392_s11  ;;  %606 = vrot.lane.b32.xlu1 %v585_v41, %s2393_s21 }
  0x57   : > { %608 = vrot.lane.b32.xlu0 %v599_v42, %s2393_s21  ;;  %702 = vrot.lane.b32.xlu1 %v578_v28, %s2394_s22 }
  0x5b   : > { %704 = vrot.lane.b32.xlu0 %v310_v33, %s2394_s22  ;;  %798 = vrot.lane.b32.xlu1 %v571_v27, %s2395_s24  ;;  %v950_v27 = vld [vmem:[%s3095_s2 + $0x48] sm:$0xff] }
  0x5f   : > { %800 = vrot.lane.b32.xlu0 %v791_v45, %s2395_s24  ;;  %895 = vrot.lane.b32.xlu1 %v2491_v10, %s2396_s25 }
  0x63   : > { %897 = vrot.lane.b32.xlu0 %v888_v24, %s2396_s25  ;;  %955 = vperm.xlu1 %2319, %v941_v47  }
  0x67   : > { %960 = vperm.xlu0 %2320, %v942_v46   ;;  %965 = vperm.xlu1 %2319, %v943_v50  }
  0x6b   : > { %970 = vperm.xlu1 %2319, %v944_v56   ;;  %975 = vperm.xlu0 %2320, %v945_v7  }
  0x6f   : > { %980 = vperm.xlu1 %2319, %v946_v8   ;;  %985 = vperm.xlu0 %2320, %v947_v17  }
  0x73   : > { %990 = vperm.xlu1 %2319, %v948_v18   ;;  %995 = vperm.xlu0 %2320, %v949_v26  }
  0x77   : > { %1000 = vperm.xlu1 %2319, %v950_v27   ;;  %1005 = vperm.xlu0 %2320, %v951_v37  }
  0x7b   : > { %1010 = vperm.xlu1 %2319, %v952_v38  }
  0x91   : > { %v2578_v48 = vpop.permute.xlu1 %412  ;;  %v314_v49 = vpop.permute.xlu0 %313 }
  0x92   : > { %v322_v53 = vrot.slane %v314_v49, 4  ;;  %v420_v2 = vrot.slane %v2578_v48, 4 }
  0x95   : > { %v409_v51 = vpop.permute.xlu1 %408  ;;  %v312_v52 = vpop.permute.xlu0 %311 }
  0x96   : > { %v321_v54 = vrot.slane %v312_v52, 4  ;;  %v418_v3 = vrot.slane %v409_v51, 4 }
  0x98   : > { %v327_v55 = vsel %vm326_vm0, %v321_v54, %v322_v53 }
  0x99   : > { %v329_v57 = vsel %vm328_vm1, %v312_v52, %v327_v55  ;;  %v508_v58 = vpop.permute.xlu1 %507  ;;  %v2588_v59 = vpop.permute.xlu0 %509 }
  0x9a   : > { %340 = vst [vmem:[#allocation2] sm:$0x22] %v329_v57  ;;  %v516_v60 = vrot.slane %v508_v58, 4  ;;  %v517_v61 = vrot.slane %v2588_v59, 4 }
  0x9c   : > { %v523_v62 = vsel %vm326_vm0, %v516_v60, %v517_v61 }
  0x9d   : > { %v601_v63 = vpop.permute.xlu1 %600  ;;  %v411_v0 = vpop.permute.xlu0 %410  ;;  %v524_v1 = vsel %vm521_vm2, %v508_v58, %v523_v62 }
  0x9e   : > { %v419_v4 = vrot.slane %v411_v0, 4  ;;  %534 = vst [vmem:[#allocation2 + $0x8] sm:$0x88] %v524_v1  ;;  %v610_v23 = vrot.slane %v601_v63, 4 }
  0xa0   : > { %v423_v5 = vsel %vm326_vm0, %v418_v3, %v419_v4  ;;  %v426_v6 = vsel %vm326_vm0, %v419_v4, %v420_v2 }
  0xa1   : > { %v425_v9 = vsel %vm424_vm3, %v409_v51, %v423_v5  ;;  %v427_v10 = vsel %vm424_vm3, %v411_v0, %v426_v6  ;;  %v506_v11 = vpop.permute.xlu0 %505  ;;  %v2608_v12 = vpop.permute.xlu1 %315 }
  0xa2   : > { %436 = vst [vmem:[#allocation2] sm:$0x44] %v425_v9  ;;  %437 = vst [vmem:[#allocation2 + $0x8] sm:$0x44] %v427_v10  ;;  %v515_v13 = vrot.slane %v506_v11, 4  ;;  %v323_v14 = vrot.slane %v2608_v12, 4 }
  0xa4   : > { %v520_v15 = vsel %vm326_vm0, %v515_v13, %v516_v60  ;;  %v330_v16 = vsel %vm326_vm0, %v322_v53, %v323_v14 }
  0xa5   : > { %v522_v19 = vsel %vm521_vm2, %v506_v11, %v520_v15  ;;  %v331_v20 = vsel %vm328_vm1, %v314_v49, %v330_v16  ;;  %v603_v21 = vpop.permute.xlu0 %602  ;;  %v2623_v22 = vpop.permute.xlu1 %604 }
  0xa6   : > { %533 = vst [vmem:[#allocation2] sm:$0x88] %v522_v19  ;;  %341 = vst [vmem:[#allocation2 + $0x8] sm:$0x22] %v331_v20  ;;  %v611_v24 = vrot.slane %v603_v21, 4  ;;  %v612_v25 = vrot.slane %v2623_v22, 4 }
  0xa8   : > { %v615_v28 = vsel %vm326_vm0, %v610_v23, %v611_v24  ;;  %v618_v29 = vsel %vm326_vm0, %v611_v24, %v612_v25 }
  0xa9   : > { %v617_v30 = vsel %vm616_vm4, %v601_v63, %v615_v28  ;;  %v619_v31 = vsel %vm616_vm4, %v603_v21, %v618_v29  ;;  %v697_v32 = vpop.permute.xlu0 %696  ;;  %v699_v33 = vpop.permute.xlu1 %698 }
  0xaa   : > { %628 = vst [vmem:[#allocation2 + $0x20] sm:$0x11] %v617_v30  ;;  %629 = vst [vmem:[#allocation2 + $0x28] sm:$0x11] %v619_v31  ;;  %v706_v34 = vrot.slane %v697_v32, 4  ;;  %v707_v35 = vrot.slane %v699_v33, 4 }
  0xac   : > { %v711_v39 = vsel %vm326_vm0, %v706_v34, %v707_v35 }
  0xad   : > { %v713_v40 = vsel %vm712_vm5, %v697_v32, %v711_v39  ;;  %v2646_v41 = vpop.permute.xlu0 %700  ;;  %v793_v42 = vpop.permute.xlu1 %792  ;;  %v934_v32 = vld [vmem:[#allocation2 + $0x8] sm:$0xff] }
  0xae   : > { %724 = vst [vmem:[#allocation2 + $0x20] sm:$0x22] %v713_v40  ;;  %v708_v43 = vrot.slane %v2646_v41, 4  ;;  %v802_v45 = vrot.slane %v793_v42, 4 }
  0xb0   : > { %v714_v44 = vsel %vm326_vm0, %v707_v35, %v708_v43 }
  0xb1   : > { %v715_v46 = vsel %vm712_vm5, %v699_v33, %v714_v44  ;;  %v795_v47 = vpop.permute.xlu0 %794  ;;  %v2653_v49 = vpop.permute.xlu1 %796 }
  0xb2   : > { %725 = vst [vmem:[#allocation2 + $0x28] sm:$0x22] %v715_v46  ;;  %v803_v50 = vrot.slane %v795_v47, 4  ;;  %v804_v51 = vrot.slane %v2653_v49, 4 }
  0xb4   : > { %v807_v52 = vsel %vm326_vm0, %v802_v45, %v803_v50  ;;  %v810_v53 = vsel %vm326_vm0, %v803_v50, %v804_v51 }
  0xb5   : > { %v809_v54 = vsel %vm808_vm6, %v793_v42, %v807_v52  ;;  %v811_v55 = vsel %vm808_vm6, %v795_v47, %v810_v53  ;;  %v890_v56 = vpop.permute.xlu0 %889  ;;  %v892_v57 = vpop.permute.xlu1 %891 }
  0xb6   : > { %820 = vst [vmem:[#allocation2 + $0x20] sm:$0x44] %v809_v54  ;;  %821 = vst [vmem:[#allocation2 + $0x28] sm:$0x44] %v811_v55  ;;  %v899_v58 = vrot.slane %v890_v56, 4  ;;  %v900_v60 = vrot.slane %v892_v57, 4 }
  0xb8   : > { %v904_v62 = vsel %vm326_vm0, %v899_v58, %v900_v60 }
  0xb9   : > { %v906_v63 = vsel %vm905_vm7, %v890_v56, %v904_v62  ;;  %v2664_v0 = vpop.permute.xlu0 %893  ;;  %v318_v1 = vpop.permute.xlu1 %317 }
  0xba   : > { %917 = vst [vmem:[#allocation2 + $0x20] sm:$0x88] %v906_v63  ;;  %v901_v3 = vrot.slane %v2664_v0, 4  ;;  %v324_v4 = vrot.slane %v318_v1, 4 }
  0xbc   : > { %v907_v5 = vsel %vm326_vm0, %v900_v60, %v901_v3  ;;  %v332_v6 = vsel %vm326_vm0, %v323_v14, %v324_v4 }
  0xbd   : > { %v908_v7 = vsel %vm905_vm7, %v892_v57, %v907_v5  ;;  %v333_v8 = vsel %vm328_vm1, %v2608_v12, %v332_v6  ;;  %v320_v9 = vpop.permute.xlu0 %319  ;;  %v415_v10 = vpop.permute.xlu1 %414  ;;  %v933_v12 = vld [vmem:[#allocation2] sm:$0xff] }
  0xbe   : > { %918 = vst [vmem:[#allocation2 + $0x28] sm:$0x88] %v908_v7  ;;  %342 = vst [vmem:[#allocation2 + $0x10] sm:$0x22] %v333_v8  ;;  %v325_v11 = vrot.slane %v320_v9, 4  ;;  %v421_v13 = vrot.slane %v415_v10, 4 }
  0xc0   : > { %v334_v15 = vsel %vm326_vm0, %v324_v4, %v325_v11  ;;  %v428_v16 = vsel %vm326_vm0, %v420_v2, %v421_v13 }
  0xc1   : > { %v335_v17 = vsel %vm328_vm1, %v318_v1, %v334_v15  ;;  %v429_v14 = vsel %vm424_vm3, %v2578_v48, %v428_v16  ;;  %v417_v18 = vpop.permute.xlu0 %416  ;;  %v512_v19 = vpop.permute.xlu1 %511  ;;  %v937_v20 = vld [vmem:[#allocation2 + $0x20] sm:$0xff] }
  0xc2   : > { %343 = vst [vmem:[#allocation2 + $0x18] sm:$0x22] %v335_v17  ;;  %438 = vst [vmem:[#allocation2 + $0x10] sm:$0x44] %v429_v14  ;;  %v422_v21 = vrot.slane %v417_v18, 4  ;;  %v518_v23 = vrot.slane %v512_v19, 4  ;;  %v2119_v24 = vcombine.high %v933_v12, %v937_v20  ;;  %v2118_v26 = vcombine.low %v933_v12, %v937_v20 }
  0xc3   : > { %v2690_v48 = vld [vmem:[%s3094_s1] sm:$0xff]   ;;  %v2332_v12 = vld [vmem:[%s3094_s1 + $0x28] sm:$0xff]  }
  0xc4   : > { %v430_v27 = vsel %vm326_vm0, %v421_v13, %v422_v21  ;;  %v525_v2 = vsel %vm326_vm0, %v517_v61, %v518_v23  ;;  %1116 = vmatprep.subr.bf16.mxu0 %v2119_v24 }
  0xc5   : > { %v431_v28 = vsel %vm424_vm3, %v415_v10, %v430_v27  ;;  %v526_v29 = vsel %vm521_vm2, %v2588_v59, %v525_v2  ;;  %v514_v30 = vpop.permute.xlu0 %513  ;;  %v607_v31 = vpop.permute.xlu1 %606  ;;  %1117 = vmatpush1.bf16.msra.mxu0 %v2118_v26  ;;  %v938_v33 = vld [vmem:[#allocation2 + $0x28] sm:$0xff] }
  0xc6   : > { %439 = vst [vmem:[#allocation2 + $0x18] sm:$0x44] %v431_v28  ;;  %535 = vst [vmem:[#allocation2 + $0x10] sm:$0x88] %v526_v29  ;;  %v519_v61 = vrot.slane %v514_v30, 4  ;;  %v613_v34 = vrot.slane %v607_v31, 4  ;;  %v2121_v35 = vcombine.high %v934_v32, %v938_v33  ;;  %v2120_v37 = vcombine.low %v934_v32, %v938_v33 }
  0xc8   : > { %v527_v38 = vsel %vm326_vm0, %v518_v23, %v519_v61  ;;  %v620_v39 = vsel %vm326_vm0, %v612_v25, %v613_v34  ;;  %1209 = vmatprep.subr.bf16.mxu1 %v2121_v35  ;;  %2126 = vmatmul.mubr.msk.bf16.vlgmr.msra.gmra.mxu0 %vm1083_vm8, %v2690_v48 }
  0xc9   : > { %v528_v59 = vsel %vm521_vm2, %v512_v19, %v527_v38  ;;  %v621_v40 = vsel %vm616_vm4, %v2623_v22, %v620_v39  ;;  %v609_v42 = vpop.permute.xlu0 %608  ;;  %v703_v44 = vpop.permute.xlu1 %702  ;;  %1210 = vmatpush1.bf16.msra.mxu1 %v2120_v37  ;;  %1144 = vmatprep.mubr.bf16.mxu0 %v2397_v36  ;;  %v2714_v22 = vld [vmem:[%s3094_s1 + $0x8] sm:$0xff]   ;;  %v2331_v19 = vld [vmem:[%s3094_s1 + $0x20] sm:$0xff]  }
  0xca   : > { %536 = vst [vmem:[#allocation2 + $0x18] sm:$0x88] %v528_v59  ;;  %630 = vst [vmem:[#allocation2 + $0x30] sm:$0x11] %v621_v40  ;;  %v614_v45 = vrot.slane %v609_v42, 4  ;;  %v709_v46 = vrot.slane %v703_v44, 4 }
  0xcc   : > { %v622_v25 = vsel %vm326_vm0, %v613_v34, %v614_v45  ;;  %v716_v47 = vsel %vm326_vm0, %v708_v43, %v709_v46  ;;  %2132 = vmatmul.mubr.msk.bf16.vlgmr.msra.gmra.mxu1 %vm1083_vm8, %v2690_v48 }
  0xcd   : > { %v623_v50 = vsel %vm616_vm4, %v607_v31, %v622_v25  ;;  %v717_v52 = vsel %vm712_vm5, %v2646_v41, %v716_v47  ;;  %v705_v53 = vpop.permute.xlu0 %704  ;;  %v799_v54 = vpop.permute.xlu1 %798  ;;  %1237 = vmatprep.mubr.bf16.mxu1 %v2397_v36  ;;  %v935_v10 = vld [vmem:[#allocation2 + $0x10] sm:$0xff] }
  0xce   : > { %631 = vst [vmem:[#allocation2 + $0x38] sm:$0x11] %v623_v50  ;;  %726 = vst [vmem:[#allocation2 + $0x30] sm:$0x22] %v717_v52  ;;  %v710_v43 = vrot.slane %v705_v53, 4  ;;  %v805_v55 = vrot.slane %v799_v54, 4 }
  0xd0   : > { %v718_v56 = vsel %vm326_vm0, %v709_v46, %v710_v43  ;;  %v812_v57 = vsel %vm326_vm0, %v804_v51, %v805_v55  ;;  %2127 = vmatmul.mubr.msk.bf16.gmra.mxu0 %vm1083_vm8, %v2714_v22 }
  0xd1   : > { %v719_v58 = vsel %vm712_vm5, %v703_v44, %v718_v56  ;;  %v813_v41 = vsel %vm808_vm6, %v2653_v49, %v812_v57  ;;  %v801_v60 = vpop.permute.xlu0 %800  ;;  %v896_v62 = vpop.permute.xlu1 %895  ;;  %1154 = vmatprep.mubr.bf16.mxu0 %v2397_v36  ;;  %v2329_v49 = vld [vmem:[%s3094_s1 + $0x10] sm:$0xff]   ;;  %v936_v16 = vld [vmem:[#allocation2 + $0x18] sm:$0xff] }
  0xd2   : > { %727 = vst [vmem:[#allocation2 + $0x38] sm:$0x22] %v719_v58  ;;  %822 = vst [vmem:[#allocation2 + $0x30] sm:$0x44] %v813_v41  ;;  %v806_v63 = vrot.slane %v801_v60, 4  ;;  %v902_v1 = vrot.slane %v896_v62, 4 }
  0xd4   : > { %v814_v4 = vsel %vm326_vm0, %v805_v55, %v806_v63  ;;  %v909_v51 = vsel %vm326_vm0, %v901_v3, %v902_v1  ;;  %2133 = vmatmul.mubr.msk.bf16.gmra.mxu1 %vm1083_vm8, %v2714_v22 }
  0xd5   : > { %v815_v5 = vsel %vm808_vm6, %v799_v54, %v814_v4  ;;  %v910_v6 = vsel %vm905_vm7, %v2664_v0, %v909_v51  ;;  %v898_v7 = vpop.permute.xlu0 %897  ;;  %1247 = vmatprep.mubr.bf16.mxu1 %v2397_v36  ;;  %v2330_v0 = vld [vmem:[%s3094_s1 + $0x18] sm:$0xff]  }
  0xd6   : > { %823 = vst [vmem:[#allocation2 + $0x38] sm:$0x44] %v815_v5  ;;  %919 = vst [vmem:[#allocation2 + $0x30] sm:$0x88] %v910_v6  ;;  %v903_v8 = vrot.slane %v898_v7, 4 }
  0xd8   : > { %v911_v3 = vsel %vm326_vm0, %v902_v1, %v903_v8  ;;  %2128 = vmatmul.mubr.msk.bf16.gmra.mxu0 %vm1083_vm8, %v2329_v49 }
  0xd9   : > { %v912_v9 = vsel %vm905_vm7, %v896_v62, %v911_v3  ;;  %1164 = vmatprep.mubr.bf16.mxu0 %v2397_v36 }
  0xda   : > { %920 = vst [vmem:[#allocation2 + $0x38] sm:$0x88] %v912_v9 }
  0xdc   : > { %2134 = vmatmul.mubr.msk.bf16.gmra.mxu1 %vm1083_vm8, %v2329_v49 }
  0xdd   : > { %v939_v11 = vld [vmem:[#allocation2 + $0x30] sm:$0xff]  ;;  %1257 = vmatprep.mubr.bf16.mxu1 %v2397_v36 }
  0xde   : > { %v2122_v13 = vcombine.low %v935_v10, %v939_v11  ;;  %v2123_v15 = vcombine.high %v935_v10, %v939_v11  ;;  %v2796_v20 = vpop.permute.xlu1 %955 }
  0xe0   : > { %1302 = vmatprep.subr.bf16.mxu0 %v2123_v15  ;;  %2129 = vmatmul.mubr.msk.bf16.gmra.mxu0 %vm1083_vm8, %v2330_v0 }
  0xe1   : > { %1303 = vmatpush1.bf16.msra.mxu0 %v2122_v13  ;;  %v940_v17 = vld [vmem:[#allocation2 + $0x38] sm:$0xff]  ;;  %1174 = vmatprep.mubr.bf16.mxu0 %v2397_v36 }
  0xe2   : > { %v2124_v14 = vcombine.low %v936_v16, %v940_v17  ;;  %v2125_v18 = vcombine.high %v936_v16, %v940_v17  ;;  %v2800_v26 = vpop.permute.xlu0 %960  ;;  %v2803_v2 = vpop.permute.xlu1 %965 }
  0xe4   : > { %1395 = vmatprep.subr.bf16.mxu1 %v2125_v18  ;;  %2135 = vmatmul.mubr.msk.bf16.gmra.mxu1 %vm1083_vm8, %v2330_v0 }
  0xe5   : > { %1396 = vmatpush1.bf16.msra.mxu1 %v2124_v14  ;;  %1267 = vmatprep.mubr.bf16.mxu1 %v2397_v36 }
  0xe6   : > { %v2811_v46 = vpop.permute.xlu1 %970  ;;  %v2822_v60 = vpop.permute.xlu0 %975 }
  0xe8   : > { %2130 = vmatmul.mubr.msk.bf16.gmra.mxu0 %vm1083_vm8, %v2331_v19 }
  0xe9   : > { %1184 = vmatprep.mubr.bf16.mxu0 %v2397_v36 }
  0xea   : > { %v2829_v13 = vpop.permute.xlu1 %980 }
  0xec   : > { %2136 = vmatmul.mubr.msk.bf16.gmra.mxu1 %vm1083_vm8, %v2331_v19 }
  0xed   : > { %1277 = vmatprep.mubr.bf16.mxu1 %v2397_v36 }
  0xf0   : > { %2131 = vmatmul.mubr.msk.bf16.gmra.mxu0 %vm1083_vm8, %v2332_v12 }
  0xf1   : > { %1320 = vmatprep.mubr.bf16.mxu0 %v2397_v36 }
  0xf4   : > { %2137 = vmatmul.mubr.msk.bf16.gmra.mxu1 %vm1083_vm8, %v2332_v12 }
  0xf5   : > { %1413 = vmatprep.mubr.bf16.mxu1 %v2397_v36 }
  0xf8   : > { %2138 = vmatmul.mubr.msk.bf16.vlgmr.msra.gmra.mxu0 %vm1083_vm8, %v2690_v48 }
  0xf9   : > { %1330 = vmatprep.mubr.bf16.mxu0 %v2397_v36 }
  0xfc   : > { %2144 = vmatmul.mubr.msk.bf16.vlgmr.msra.gmra.mxu1 %vm1083_vm8, %v2690_v48 }
  0xfd   : > { %1423 = vmatprep.mubr.bf16.mxu1 %v2397_v36 }
 0x100   : > { %2139 = vmatmul.mubr.msk.bf16.gmra.mxu0 %vm1083_vm8, %v2714_v22 }
 0x101   : > { %1340 = vmatprep.mubr.bf16.mxu0 %v2397_v36 }
 0x104   : > { %2145 = vmatmul.mubr.msk.bf16.gmra.mxu1 %vm1083_vm8, %v2714_v22 }
 0x105   : > { %1433 = vmatprep.mubr.bf16.mxu1 %v2397_v36 }
 0x108   : > { %2140 = vmatmul.mubr.msk.bf16.gmra.mxu0 %vm1083_vm8, %v2329_v49 }
 0x109   : > { %1350 = vmatprep.mubr.bf16.mxu0 %v2397_v36 }
 0x10c   : > { %2146 = vmatmul.mubr.msk.bf16.gmra.mxu1 %vm1083_vm8, %v2329_v49 }
 0x10d   : > { %1443 = vmatprep.mubr.bf16.mxu1 %v2397_v36 }
 0x110   : > { %2141 = vmatmul.mubr.msk.bf16.gmra.mxu0 %vm1083_vm8, %v2330_v0 }
 0x111   : > { %1360 = vmatprep.mubr.bf16.mxu0 %v2397_v36 }
 0x114   : > { %2147 = vmatmul.mubr.msk.bf16.gmra.mxu1 %vm1083_vm8, %v2330_v0 }
 0x115   : > { %1453 = vmatprep.mubr.bf16.mxu1 %v2397_v36 }
 0x118   : > { %2142 = vmatmul.mubr.msk.bf16.gmra.mxu0 %vm1083_vm8, %v2331_v19 }
 0x119   : > { %1370 = vmatprep.mubr.bf16.mxu0 %v2397_v36 }
 0x11c   : > { %2148 = vmatmul.mubr.msk.bf16.gmra.mxu1 %vm1083_vm8, %v2331_v19 }
 0x11d   : > { %1463 = vmatprep.mubr.bf16.mxu1 %v2397_v36 }
 0x120   : > { %2143 = vmatmul.mubr.msk.bf16.gmra.mxu0 %vm1083_vm8, %v2332_v12 }
 0x124   : > { %2149 = vmatmul.mubr.msk.bf16.gmra.mxu1 %vm1083_vm8, %v2332_v12 }
 0x188   : > { %v1136_v21 = vpop.f32.mrf.mxu0 }
 0x189   : > { %v1137_v23 = vadd.f32 %v1136_v21, %v2796_v20 }
 0x18a   : > { %v1138_v24 = vpop.f32.mrf.mxu0 }
 0x18b   : > { %v1139_v27 = vadd.f32 %v1138_v24, %v2796_v20  ;;  %v1474_v28 = vmax.f32 %v1137_v23, 0.0 }
 0x18c   : > { %v1229_v48 = vpop.f32.mrf.mxu1  ;;  %v1140_v36 = vpop.f32.mrf.mxu0 }
 0x18d   : > { %v1141_v29 = vadd.f32 %v1140_v36, %v2800_v26  ;;  %v1230_v30 = vadd.f32 %v1229_v48, %v2796_v20  ;;  %v1475_v31 = vmax.f32 %v1139_v27, 0.0 }
 0x18e   : > { %v1231_v32 = vpop.f32.mrf.mxu1  ;;  %v1142_v33 = vpop.f32.mrf.mxu0 }
 0x18f   : > { %v1143_v61 = vadd.f32 %v1142_v33, %v2800_v26  ;;  %v1232_v34 = vadd.f32 %v1231_v32, %v2796_v20  ;;  %v1482_v38 = vmax.f32 %v1141_v29, 0.0  ;;  %v1476_v39 = vmax.f32 %v1230_v30, 0.0 }
 0x190   : > { %v1233_v35 = vpop.f32.mrf.mxu1  ;;  %v1146_v37 = vpop.f32.mrf.mxu0  ;;  %v2202_v59 = vpack.c.bf16 %v1475_v31, %v1474_v28 }
 0x191   : > { %v1234_v40 = vadd.f32 %v1233_v35, %v2800_v26  ;;  %v1483_v42 = vmax.f32 %v1143_v61, 0.0  ;;  %v1477_v44 = vmax.f32 %v1232_v34, 0.0  ;;  %v1147_v45 = vadd.f32 %v1146_v37, %v2803_v2  ;;  %v2838_v28 = vpop.permute.xlu0 %985 }
 0x192   : > { %v1235_v25 = vpop.f32.mrf.mxu1  ;;  %v1148_v47 = vpop.f32.mrf.mxu0  ;;  %1858 = vst [vmem:[%s2813_s12] sm:$0xff] %v2202_v59 }
 0x193   : > { %v1236_v22 = vadd.f32 %v1235_v25, %v2800_v26  ;;  %v2206_v50 = vpack.c.bf16 %v1483_v42, %v1482_v38  ;;  %v2203_v52 = vpack.c.bf16 %v1477_v44, %v1476_v39  ;;  %v1149_v43 = vadd.f32 %v1148_v47, %v2803_v2 }
 0x194   : > { %v1239_v53 = vpop.f32.mrf.mxu1  ;;  %v1150_v54 = vpop.f32.mrf.mxu0  ;;  %v1490_v55 = vmax.f32 %v1147_v45, 0.0  ;;  %v1484_v56 = vmax.f32 %v1234_v40, 0.0 }
 0x195   : > { %v1485_v57 = vmax.f32 %v1236_v22, 0.0  ;;  %1862 = vst [vmem:[%s2813_s12 + $0x20] sm:$0xff] %v2206_v50  ;;  %1859 = vst [vmem:[%s2813_s12 + $0x8] sm:$0xff] %v2203_v52  ;;  %v1240_v58 = vadd.f32 %v1239_v53, %v2803_v2  ;;  %v1151_v41 = vadd.f32 %v1150_v54, %v2811_v46  ;;  %v1491_v1 = vmax.f32 %v1149_v43, 0.0  ;;  %v2845_v45 = vpop.permute.xlu1 %990 }
 0x196   : > { %v1241_v62 = vpop.f32.mrf.mxu1  ;;  %v1152_v63 = vpop.f32.mrf.mxu0 }
 0x197   : > { %v2207_v4 = vpack.c.bf16 %v1485_v57, %v1484_v56  ;;  %v1242_v51 = vadd.f32 %v1241_v62, %v2803_v2  ;;  %v1153_v49 = vadd.f32 %v1152_v63, %v2811_v46  ;;  %v1492_v7 = vmax.f32 %v1240_v58, 0.0  ;;  %v2854_v62 = vpop.permute.xlu0 %995 }
 0x198   : > { %v1243_v5 = vpop.f32.mrf.mxu1  ;;  %v1156_v6 = vpop.f32.mrf.mxu0  ;;  %v2210_v8 = vpack.c.bf16 %v1491_v1, %v1490_v55  ;;  %v1498_v3 = vmax.f32 %v1151_v41, 0.0 }
 0x199   : > { %1863 = vst [vmem:[%s2813_s12 + $0x28] sm:$0xff] %v2207_v4  ;;  %v1493_v9 = vmax.f32 %v1242_v51, 0.0  ;;  %v1244_v0 = vadd.f32 %v1243_v5, %v2811_v46  ;;  %v1499_v10 = vmax.f32 %v1153_v49, 0.0  ;;  %v1157_v11 = vadd.f32 %v1156_v6, %v2822_v60 }
 0x19a   : > { %v1245_v15 = vpop.f32.mrf.mxu1  ;;  %v1158_v16 = vpop.f32.mrf.mxu0  ;;  %1866 = vst [vmem:[%s2813_s12 + $0x40] sm:$0xff] %v2210_v8 }
 0x19b   : > { %v2211_v17 = vpack.c.bf16 %v1493_v9, %v1492_v7  ;;  %v1246_v14 = vadd.f32 %v1245_v15, %v2811_v46  ;;  %v2214_v18 = vpack.c.bf16 %v1499_v10, %v1498_v3  ;;  %v1159_v21 = vadd.f32 %v1158_v16, %v2822_v60  ;;  %v2861_v16 = vpop.permute.xlu1 %1000 }
 0x19c   : > { %v1249_v19 = vpop.f32.mrf.mxu1  ;;  %v1160_v12 = vpop.f32.mrf.mxu0  ;;  %v1506_v23 = vmax.f32 %v1157_v11, 0.0  ;;  %v1500_v24 = vmax.f32 %v1244_v0, 0.0 }
 0x19d   : > { %1867 = vst [vmem:[%s2813_s12 + $0x48] sm:$0xff] %v2211_v17  ;;  %v1501_v27 = vmax.f32 %v1246_v14, 0.0  ;;  %1870 = vst [vmem:[%s2813_s12 + $0x60] sm:$0xff] %v2214_v18  ;;  %v1250_v48 = vadd.f32 %v1249_v19, %v2822_v60  ;;  %v1161_v36 = vadd.f32 %v1160_v12, %v2829_v13  ;;  %v1507_v31 = vmax.f32 %v1159_v21, 0.0 }
 0x19e   : > { %v1251_v29 = vpop.f32.mrf.mxu1  ;;  %v1162_v30 = vpop.f32.mrf.mxu0 }
 0x19f   : > { %v2215_v32 = vpack.c.bf16 %v1501_v27, %v1500_v24  ;;  %v1252_v33 = vadd.f32 %v1251_v29, %v2822_v60  ;;  %v1163_v61 = vadd.f32 %v1162_v30, %v2829_v13  ;;  %v1508_v37 = vmax.f32 %v1250_v48, 0.0 }
 0x1a0   : > { %v1253_v34 = vpop.f32.mrf.mxu1  ;;  %v1166_v35 = vpop.f32.mrf.mxu0  ;;  %v2218_v38 = vpack.c.bf16 %v1507_v31, %v1506_v23  ;;  %v1514_v39 = vmax.f32 %v1161_v36, 0.0 }
 0x1a1   : > { %1871 = vst [vmem:[%s2813_s12 + $0x68] sm:$0xff] %v2215_v32  ;;  %v1509_v59 = vmax.f32 %v1252_v33, 0.0  ;;  %v1254_v40 = vadd.f32 %v1253_v34, %v2829_v13  ;;  %v1515_v42 = vmax.f32 %v1163_v61, 0.0  ;;  %v1167_v44 = vadd.f32 %v1166_v35, %v2838_v28  ;;  %v2870_v31 = vpop.permute.xlu0 %1005 }
 0x1a2   : > { %v1255_v25 = vpop.f32.mrf.mxu1  ;;  %v1168_v47 = vpop.f32.mrf.mxu0  ;;  %1874 = vst [vmem:[%s2813_s12 + $0x80] sm:$0xff] %v2218_v38 }
 0x1a3   : > { %v2219_v22 = vpack.c.bf16 %v1509_v59, %v1508_v37  ;;  %v1256_v50 = vadd.f32 %v1255_v25, %v2829_v13  ;;  %v2222_v52 = vpack.c.bf16 %v1515_v42, %v1514_v39  ;;  %v1169_v43 = vadd.f32 %v1168_v47, %v2838_v28 }
 0x1a4   : > { %v1259_v53 = vpop.f32.mrf.mxu1  ;;  %v1170_v54 = vpop.f32.mrf.mxu0  ;;  %v1522_v55 = vmax.f32 %v1167_v44, 0.0  ;;  %v1516_v56 = vmax.f32 %v1254_v40, 0.0 }
 0x1a5   : > { %1875 = vst [vmem:[%s2813_s12 + $0x88] sm:$0xff] %v2219_v22  ;;  %v1517_v57 = vmax.f32 %v1256_v50, 0.0  ;;  %1878 = vst [vmem:[%s2813_s12 + $0xa0] sm:$0xff] %v2222_v52  ;;  %v1260_v58 = vadd.f32 %v1259_v53, %v2838_v28  ;;  %v1171_v41 = vadd.f32 %v1170_v54, %v2845_v45  ;;  %v1523_v4 = vmax.f32 %v1169_v43, 0.0 }
 0x1a6   : > { %v1261_v63 = vpop.f32.mrf.mxu1  ;;  %v1172_v1 = vpop.f32.mrf.mxu0 }
 0x1a7   : > { %v2223_v51 = vpack.c.bf16 %v1517_v57, %v1516_v56  ;;  %v1262_v49 = vadd.f32 %v1261_v63, %v2838_v28  ;;  %v1173_v5 = vadd.f32 %v1172_v1, %v2845_v45  ;;  %v1524_v8 = vmax.f32 %v1260_v58, 0.0 }
 0x1a8   : > { %v1263_v6 = vpop.f32.mrf.mxu1  ;;  %v1176_v7 = vpop.f32.mrf.mxu0  ;;  %v2226_v3 = vpack.c.bf16 %v1523_v4, %v1522_v55  ;;  %v1530_v9 = vmax.f32 %v1171_v41, 0.0 }
 0x1a9   : > { %1879 = vst [vmem:[%s2813_s12 + $0xa8] sm:$0xff] %v2223_v51  ;;  %v1525_v0 = vmax.f32 %v1262_v49, 0.0  ;;  %v1264_v10 = vadd.f32 %v1263_v6, %v2845_v45  ;;  %v1531_v11 = vmax.f32 %v1173_v5, 0.0  ;;  %v1177_v15 = vadd.f32 %v1176_v7, %v2854_v62  ;;  %v2879_v55 = vpop.permute.xlu1 %1010 }
 0x1aa   : > { %v1265_v17 = vpop.f32.mrf.mxu1  ;;  %v1178_v14 = vpop.f32.mrf.mxu0  ;;  %1882 = vst [vmem:[%s2813_s12 + $0xc0] sm:$0xff] %v2226_v3 }
 0x1ab   : > { %v2227_v18 = vpack.c.bf16 %v1525_v0, %v1524_v8  ;;  %v1266_v19 = vadd.f32 %v1265_v17, %v2845_v45  ;;  %v2230_v12 = vpack.c.bf16 %v1531_v11, %v1530_v9  ;;  %v1179_v24 = vadd.f32 %v1178_v14, %v2854_v62 }
 0x1ac   : > { %v1269_v21 = vpop.f32.mrf.mxu1  ;;  %v1180_v23 = vpop.f32.mrf.mxu0  ;;  %v1538_v27 = vmax.f32 %v1177_v15, 0.0  ;;  %v1532_v48 = vmax.f32 %v1264_v10, 0.0 }
 0x1ad   : > { %1883 = vst [vmem:[%s2813_s12 + $0xc8] sm:$0xff] %v2227_v18  ;;  %v1533_v36 = vmax.f32 %v1266_v19, 0.0  ;;  %1886 = vst [vmem:[%s2813_s12 + $0xe0] sm:$0xff] %v2230_v12  ;;  %v1270_v29 = vadd.f32 %v1269_v21, %v2854_v62  ;;  %v1181_v30 = vadd.f32 %v1180_v23, %v2861_v16  ;;  %v1539_v61 = vmax.f32 %v1179_v24, 0.0 }
 0x1ae   : > { %v1271_v32 = vpop.f32.mrf.mxu1  ;;  %v1182_v33 = vpop.f32.mrf.mxu0 }
 0x1af   : > { %v2231_v34 = vpack.c.bf16 %v1533_v36, %v1532_v48  ;;  %v1272_v35 = vadd.f32 %v1271_v32, %v2854_v62  ;;  %v1183_v37 = vadd.f32 %v1182_v33, %v2861_v16  ;;  %v1540_v59 = vmax.f32 %v1270_v29, 0.0 }
 0x1b0   : > { %v1273_v38 = vpop.f32.mrf.mxu1  ;;  %v1186_v39 = vpop.f32.mrf.mxu0  ;;  %v2234_v40 = vpack.c.bf16 %v1539_v61, %v1538_v27  ;;  %v1546_v42 = vmax.f32 %v1181_v30, 0.0 }
 0x1b1   : > { %1887 = vst [vmem:[%s2813_s12 + $0xe8] sm:$0xff] %v2231_v34  ;;  %v1541_v44 = vmax.f32 %v1272_v35, 0.0  ;;  %v1274_v25 = vadd.f32 %v1273_v38, %v2861_v16  ;;  %v1547_v47 = vmax.f32 %v1183_v37, 0.0  ;;  %v1187_v22 = vadd.f32 %v1186_v39, %v2870_v31 }
 0x1b2   : > { %v1275_v50 = vpop.f32.mrf.mxu1  ;;  %v1188_v52 = vpop.f32.mrf.mxu0  ;;  %1890 = vst [vmem:[%s2813_s12 + $0x100] sm:$0xff] %v2234_v40 }
 0x1b3   : > { %v2235_v53 = vpack.c.bf16 %v1541_v44, %v1540_v59  ;;  %v1276_v54 = vadd.f32 %v1275_v50, %v2861_v16  ;;  %v2238_v43 = vpack.c.bf16 %v1547_v47, %v1546_v42  ;;  %v1189_v58 = vadd.f32 %v1188_v52, %v2870_v31 }
 0x1b4   : > { %v1279_v56 = vpop.f32.mrf.mxu1  ;;  %v1190_v57 = vpop.f32.mrf.mxu0  ;;  %v1554_v41 = vmax.f32 %v1187_v22, 0.0  ;;  %v1548_v63 = vmax.f32 %v1274_v25, 0.0 }
 0x1b5   : > { %1891 = vst [vmem:[%s2813_s12 + $0x108] sm:$0xff] %v2235_v53  ;;  %v1549_v1 = vmax.f32 %v1276_v54, 0.0  ;;  %1894 = vst [vmem:[%s2813_s12 + $0x120] sm:$0xff] %v2238_v43  ;;  %v1280_v4 = vadd.f32 %v1279_v56, %v2870_v31  ;;  %v1555_v5 = vmax.f32 %v1189_v58, 0.0  ;;  %v1191_v6 = vadd.f32 %v1190_v57, %v2879_v55 }
 0x1b6   : > { %v1281_v51 = vpop.f32.mrf.mxu1  ;;  %v1192_v49 = vpop.f32.mrf.mxu0 }
 0x1b7   : > { %v2239_v7 = vpack.c.bf16 %v1549_v1, %v1548_v63  ;;  %v1282_v8 = vadd.f32 %v1281_v51, %v2870_v31  ;;  %v1193_v3 = vadd.f32 %v1192_v49, %v2879_v55  ;;  %v2242_v10 = vpack.c.bf16 %v1555_v5, %v1554_v41 }
 0x1b8   : > { %v1283_v9 = vpop.f32.mrf.mxu1  ;;  %v1322_v0 = vpop.f32.mrf.mxu0  ;;  %v1556_v15 = vmax.f32 %v1280_v4, 0.0  ;;  %v1562_v21 = vmax.f32 %v1191_v6, 0.0 }
 0x1b9   : > { %v1323_v11 = vadd.f32 %v1322_v0, %v2796_v20  ;;  %1895 = vst [vmem:[%s2813_s12 + $0x128] sm:$0xff] %v2239_v7  ;;  %v1557_v17 = vmax.f32 %v1282_v8, 0.0  ;;  %v1563_v14 = vmax.f32 %v1193_v3, 0.0  ;;  %1898 = vst [vmem:[%s2813_s12 + $0x140] sm:$0xff] %v2242_v10  ;;  %v1284_v12 = vadd.f32 %v1283_v9, %v2879_v55 }
 0x1ba   : > { %v1285_v18 = vpop.f32.mrf.mxu1  ;;  %v1324_v19 = vpop.f32.mrf.mxu0 }
 0x1bb   : > { %v1478_v23 = vmax.f32 %v1323_v11, 0.0  ;;  %v1325_v24 = vadd.f32 %v1324_v19, %v2796_v20  ;;  %v2243_v27 = vpack.c.bf16 %v1557_v17, %v1556_v15  ;;  %v1286_v48 = vadd.f32 %v1285_v18, %v2879_v55 }
 0x1bc   : > { %v1415_v36 = vpop.f32.mrf.mxu1  ;;  %v1326_v29 = vpop.f32.mrf.mxu0  ;;  %v2246_v30 = vpack.c.bf16 %v1563_v14, %v1562_v21  ;;  %v1564_v38 = vmax.f32 %v1284_v12, 0.0 }
 0x1bd   : > { %v1416_v32 = vadd.f32 %v1415_v36, %v2796_v20  ;;  %v1479_v33 = vmax.f32 %v1325_v24, 0.0  ;;  %1899 = vst [vmem:[%s2813_s12 + $0x148] sm:$0xff] %v2243_v27  ;;  %v1565_v61 = vmax.f32 %v1286_v48, 0.0  ;;  %v1327_v35 = vadd.f32 %v1326_v29, %v2800_v26 }
 0x1be   : > { %v1417_v34 = vpop.f32.mrf.mxu1  ;;  %v1328_v37 = vpop.f32.mrf.mxu0  ;;  %1902 = vst [vmem:[%s2813_s12 + $0x160] sm:$0xff] %v2246_v30 }
 0x1bf   : > { %v2204_v39 = vpack.c.bf16 %v1479_v33, %v1478_v23  ;;  %v1418_v59 = vadd.f32 %v1417_v34, %v2796_v20  ;;  %v1329_v42 = vadd.f32 %v1328_v37, %v2800_v26  ;;  %v2247_v25 = vpack.c.bf16 %v1565_v61, %v1564_v38 }
 0x1c0   : > { %v1419_v40 = vpop.f32.mrf.mxu1  ;;  %v1332_v44 = vpop.f32.mrf.mxu0  ;;  %v1480_v47 = vmax.f32 %v1416_v32, 0.0  ;;  %v1486_v53 = vmax.f32 %v1327_v35, 0.0 }
 0x1c1   : > { %1860 = vst [vmem:[%s2813_s12 + $0x10] sm:$0xff] %v2204_v39  ;;  %v1481_v22 = vmax.f32 %v1418_v59, 0.0  ;;  %v1420_v50 = vadd.f32 %v1419_v40, %v2800_v26  ;;  %v1333_v52 = vadd.f32 %v1332_v44, %v2803_v2  ;;  %v1487_v54 = vmax.f32 %v1329_v42, 0.0  ;;  %1903 = vst [vmem:[%s2813_s12 + $0x168] sm:$0xff] %v2247_v25 }
 0x1c2   : > { %v1421_v43 = vpop.f32.mrf.mxu1  ;;  %v1334_v56 = vpop.f32.mrf.mxu0 }
 0x1c3   : > { %v2205_v20 = vpack.c.bf16 %v1481_v22, %v1480_v47  ;;  %v1422_v57 = vadd.f32 %v1421_v43, %v2800_v26  ;;  %v2208_v58 = vpack.c.bf16 %v1487_v54, %v1486_v53  ;;  %v1494_v41 = vmax.f32 %v1333_v52, 0.0 }
 0x1c4   : > { %v1425_v63 = vpop.f32.mrf.mxu1  ;;  %v1335_v1 = vadd.f32 %v1334_v56, %v2803_v2  ;;  %v1336_v4 = vpop.f32.mrf.mxu0  ;;  %v1488_v51 = vmax.f32 %v1420_v50, 0.0 }
 0x1c5   : > { %1861 = vst [vmem:[%s2813_s12 + $0x18] sm:$0xff] %v2205_v20  ;;  %v1489_v49 = vmax.f32 %v1422_v57, 0.0  ;;  %v1426_v5 = vadd.f32 %v1425_v63, %v2803_v2  ;;  %1864 = vst [vmem:[%s2813_s12 + $0x30] sm:$0xff] %v2208_v58  ;;  %v1337_v8 = vadd.f32 %v1336_v4, %v2811_v46 }
 0x1c6   : > { %v1495_v6 = vmax.f32 %v1335_v1, 0.0  ;;  %v1427_v7 = vpop.f32.mrf.mxu1  ;;  %v1338_v3 = vpop.f32.mrf.mxu0 }
 0x1c7   : > { %v2209_v26 = vpack.c.bf16 %v1489_v49, %v1488_v51  ;;  %v1428_v9 = vadd.f32 %v1427_v7, %v2803_v2  ;;  %v1339_v11 = vadd.f32 %v1338_v3, %v2811_v46  ;;  %v1496_v17 = vmax.f32 %v1426_v5, 0.0 }
 0x1c8   : > { %v2212_v0 = vpack.c.bf16 %v1495_v6, %v1494_v41  ;;  %v1429_v10 = vpop.f32.mrf.mxu1  ;;  %v1342_v15 = vpop.f32.mrf.mxu0  ;;  %v1502_v12 = vmax.f32 %v1337_v8, 0.0 }
 0x1c9   : > { %1865 = vst [vmem:[%s2813_s12 + $0x38] sm:$0xff] %v2209_v26  ;;  %v1497_v14 = vmax.f32 %v1428_v9, 0.0  ;;  %v1430_v18 = vadd.f32 %v1429_v10, %v2811_v46  ;;  %v1343_v19 = vadd.f32 %v1342_v15, %v2822_v60  ;;  %v1503_v21 = vmax.f32 %v1339_v11, 0.0 }
 0x1ca   : > { %1868 = vst [vmem:[%s2813_s12 + $0x50] sm:$0xff] %v2212_v0  ;;  %v1431_v23 = vpop.f32.mrf.mxu1  ;;  %v1344_v24 = vpop.f32.mrf.mxu0 }
 0x1cb   : > { %v2213_v2 = vpack.c.bf16 %v1497_v14, %v1496_v17  ;;  %v1432_v27 = vadd.f32 %v1431_v23, %v2811_v46  ;;  %v2216_v48 = vpack.c.bf16 %v1503_v21, %v1502_v12  ;;  %v1510_v36 = vmax.f32 %v1343_v19, 0.0 }
 0x1cc   : > { %v1435_v29 = vpop.f32.mrf.mxu1  ;;  %v1345_v30 = vadd.f32 %v1344_v24, %v2822_v60  ;;  %v1346_v32 = vpop.f32.mrf.mxu0  ;;  %v1504_v33 = vmax.f32 %v1430_v18, 0.0 }
 0x1cd   : > { %1869 = vst [vmem:[%s2813_s12 + $0x58] sm:$0xff] %v2213_v2  ;;  %v1505_v61 = vmax.f32 %v1432_v27, 0.0  ;;  %v1436_v34 = vadd.f32 %v1435_v29, %v2822_v60  ;;  %1872 = vst [vmem:[%s2813_s12 + $0x70] sm:$0xff] %v2216_v48  ;;  %v1347_v38 = vadd.f32 %v1346_v32, %v2829_v13 }
 0x1ce   : > { %v1511_v35 = vmax.f32 %v1345_v30, 0.0  ;;  %v1437_v37 = vpop.f32.mrf.mxu1  ;;  %v1348_v39 = vpop.f32.mrf.mxu0 }
 0x1cf   : > { %v2217_v46 = vpack.c.bf16 %v1505_v61, %v1504_v33  ;;  %v1438_v59 = vadd.f32 %v1437_v37, %v2822_v60  ;;  %v1349_v44 = vadd.f32 %v1348_v39, %v2829_v13  ;;  %v1512_v47 = vmax.f32 %v1436_v34, 0.0 }
 0x1d0   : > { %v2220_v40 = vpack.c.bf16 %v1511_v35, %v1510_v36  ;;  %v1439_v42 = vpop.f32.mrf.mxu1  ;;  %v1352_v25 = vpop.f32.mrf.mxu0  ;;  %v1518_v53 = vmax.f32 %v1347_v38, 0.0 }
 0x1d1   : > { %1873 = vst [vmem:[%s2813_s12 + $0x78] sm:$0xff] %v2217_v46  ;;  %v1513_v22 = vmax.f32 %v1438_v59, 0.0  ;;  %v1440_v50 = vadd.f32 %v1439_v42, %v2829_v13  ;;  %v1353_v52 = vadd.f32 %v1352_v25, %v2838_v28  ;;  %v1519_v54 = vmax.f32 %v1349_v44, 0.0 }
 0x1d2   : > { %1876 = vst [vmem:[%s2813_s12 + $0x90] sm:$0xff] %v2220_v40  ;;  %v1441_v43 = vpop.f32.mrf.mxu1  ;;  %v1354_v56 = vpop.f32.mrf.mxu0 }
 0x1d3   : > { %v2221_v60 = vpack.c.bf16 %v1513_v22, %v1512_v47  ;;  %v1442_v20 = vadd.f32 %v1441_v43, %v2829_v13  ;;  %v2224_v57 = vpack.c.bf16 %v1519_v54, %v1518_v53  ;;  %v1526_v58 = vmax.f32 %v1353_v52, 0.0 }
 0x1d4   : > { %v1445_v41 = vpop.f32.mrf.mxu1  ;;  %v1355_v63 = vadd.f32 %v1354_v56, %v2838_v28  ;;  %v1356_v1 = vpop.f32.mrf.mxu0  ;;  %v1520_v4 = vmax.f32 %v1440_v50, 0.0 }
 0x1d5   : > { %1877 = vst [vmem:[%s2813_s12 + $0x98] sm:$0xff] %v2221_v60  ;;  %v1521_v51 = vmax.f32 %v1442_v20, 0.0  ;;  %v1446_v49 = vadd.f32 %v1445_v41, %v2838_v28  ;;  %1880 = vst [vmem:[%s2813_s12 + $0xb0] sm:$0xff] %v2224_v57  ;;  %v1357_v7 = vadd.f32 %v1356_v1, %v2845_v45 }
 0x1d6   : > { %v1527_v5 = vmax.f32 %v1355_v63, 0.0  ;;  %v1447_v6 = vpop.f32.mrf.mxu1  ;;  %v1358_v8 = vpop.f32.mrf.mxu0 }
 0x1d7   : > { %v2225_v13 = vpack.c.bf16 %v1521_v51, %v1520_v4  ;;  %v1448_v3 = vadd.f32 %v1447_v6, %v2838_v28  ;;  %v1359_v0 = vadd.f32 %v1358_v8, %v2845_v45  ;;  %v1528_v11 = vmax.f32 %v1446_v49, 0.0 }
 0x1d8   : > { %v2228_v26 = vpack.c.bf16 %v1527_v5, %v1526_v58  ;;  %v1449_v9 = vpop.f32.mrf.mxu1  ;;  %v1362_v10 = vpop.f32.mrf.mxu0  ;;  %v1534_v18 = vmax.f32 %v1357_v7, 0.0 }
 0x1d9   : > { %1881 = vst [vmem:[%s2813_s12 + $0xb8] sm:$0xff] %v2225_v13  ;;  %v1529_v15 = vmax.f32 %v1448_v3, 0.0  ;;  %v1450_v17 = vadd.f32 %v1449_v9, %v2845_v45  ;;  %v1363_v14 = vadd.f32 %v1362_v10, %v2854_v62  ;;  %v1535_v19 = vmax.f32 %v1359_v0, 0.0 }
 0x1da   : > { %1884 = vst [vmem:[%s2813_s12 + $0xd0] sm:$0xff] %v2228_v26  ;;  %v1451_v12 = vpop.f32.mrf.mxu1  ;;  %v1364_v21 = vpop.f32.mrf.mxu0 }
 0x1db   : > { %v2229_v28 = vpack.c.bf16 %v1529_v15, %v1528_v11  ;;  %v1452_v23 = vadd.f32 %v1451_v12, %v2845_v45  ;;  %v2232_v24 = vpack.c.bf16 %v1535_v19, %v1534_v18  ;;  %v1542_v2 = vmax.f32 %v1363_v14, 0.0  ;;  %v1932_v18 = vld [vmem:[%s2813_s12 + $0x8] sm:$0xff] (%p2464_p5)  ;;  %v1934_v19 = vld [vmem:[%s2813_s12 + $0x10] sm:$0xff] (%p2464_p5)  ;;  %v1936_v12 = vld [vmem:[%s2813_s12 + $0x18] sm:$0xff] (%p2464_p5) }
 0x1dc   : > { %v1455_v27 = vpop.f32.mrf.mxu1  ;;  %v1365_v48 = vadd.f32 %v1364_v21, %v2854_v62  ;;  %v1366_v36 = vpop.f32.mrf.mxu0  ;;  %v1536_v29 = vmax.f32 %v1450_v17, 0.0  ;;  %v1938_v21 = vld [vmem:[%s2813_s12 + $0x20] sm:$0xff] (%p2464_p5)  ;;  %1933 = vst [vmem:[%s2986_s15 + $0x8] sm:$0xff] (%p2464_p5), %v1932_v18  ;;  %1935 = vst [vmem:[%s2986_s15 + $0x10] sm:$0xff] (%p2464_p5), %v1934_v19 }
 0x1dd   : > { %1885 = vst [vmem:[%s2813_s12 + $0xd8] sm:$0xff] %v2229_v28  ;;  %v1537_v30 = vmax.f32 %v1452_v23, 0.0  ;;  %v1456_v32 = vadd.f32 %v1455_v27, %v2854_v62  ;;  %1888 = vst [vmem:[%s2813_s12 + $0xf0] sm:$0xff] %v2232_v24  ;;  %v1367_v34 = vadd.f32 %v1366_v36, %v2861_v16  ;;  %v1940_v28 = vld [vmem:[%s2813_s12 + $0x28] sm:$0xff] (%p2464_p5)  ;;  %v1942_v23 = vld [vmem:[%s2813_s12 + $0x30] sm:$0xff] (%p2464_p5) }
 0x1de   : > { %v1543_v33 = vmax.f32 %v1365_v48, 0.0  ;;  %v1457_v61 = vpop.f32.mrf.mxu1  ;;  %v1368_v35 = vpop.f32.mrf.mxu0  ;;  %v1944_v24 = vld [vmem:[%s2813_s12 + $0x38] sm:$0xff] (%p2464_p5)  ;;  %v1948_v27 = vld [vmem:[%s2813_s12 + $0x48] sm:$0xff] (%p2464_p5)  ;;  %v1950_v48 = vld [vmem:[%s2813_s12 + $0x50] sm:$0xff] (%p2464_p5)  ;;  %1937 = vst [vmem:[%s2986_s15 + $0x18] sm:$0xff] (%p2464_p5), %v1936_v12 }
 0x1df   : > { %v2233_v45 = vpack.c.bf16 %v1537_v30, %v1536_v29  ;;  %v1458_v37 = vadd.f32 %v1457_v61, %v2854_v62  ;;  %v1369_v46 = vadd.f32 %v1368_v35, %v2861_v16  ;;  %v1544_v40 = vmax.f32 %v1456_v32, 0.0  ;;  %v1952_v36 = vld [vmem:[%s2813_s12 + $0x58] sm:$0xff] (%p2464_p5)  ;;  %v1954_v29 = vld [vmem:[%s2813_s12 + $0x60] sm:$0xff] (%p2464_p5)  ;;  %v1956_v30 = vld [vmem:[%s2813_s12 + $0x68] sm:$0xff] (%p2464_p5)  ;;  %1939 = vst [vmem:[%s2986_s15 + $0x80] sm:$0xff] (%p2464_p5), %v1938_v21 }
 0x1e0   : > { %v2236_v38 = vpack.c.bf16 %v1543_v33, %v1542_v2  ;;  %v1459_v39 = vpop.f32.mrf.mxu1  ;;  %v1372_v59 = vpop.f32.mrf.mxu0  ;;  %v1550_v25 = vmax.f32 %v1367_v34, 0.0  ;;  %v1946_v2 = vld [vmem:[%s2813_s12 + $0x40] sm:$0xff] (%p2464_p5)  ;;  %v1958_v32 = vld [vmem:[%s2813_s12 + $0x70] sm:$0xff] (%p2464_p5)  ;;  %1941 = vst [vmem:[%s2986_s15 + $0x88] sm:$0xff] (%p2464_p5), %v1940_v28  ;;  %1943 = vst [vmem:[%s2986_s15 + $0x90] sm:$0xff] (%p2464_p5), %v1942_v23 }
 0x1e1   : > { %1889 = vst [vmem:[%s2813_s12 + $0xf8] sm:$0xff] %v2233_v45  ;;  %v1545_v42 = vmax.f32 %v1458_v37, 0.0  ;;  %v1460_v44 = vadd.f32 %v1459_v39, %v2861_v16  ;;  %v1551_v47 = vmax.f32 %v1369_v46, 0.0  ;;  %v1373_v50 = vadd.f32 %v1372_v59, %v2870_v31  ;;  %1945 = vst [vmem:[%s2986_s15 + $0x98] sm:$0xff] (%p2464_p5), %v1944_v24  ;;  %v1960_v33 = vld [vmem:[%s2813_s12 + $0x78] sm:$0xff] (%p2464_p5)  ;;  %v1962_v61 = vld [vmem:[%s2813_s12 + $0x80] sm:$0xff] (%p2464_p5) }
 0x1e2   : > { %1892 = vst [vmem:[%s2813_s12 + $0x110] sm:$0xff] %v2236_v38  ;;  %v1461_v22 = vpop.f32.mrf.mxu1  ;;  %v1374_v52 = vpop.f32.mrf.mxu0  ;;  %1947 = vst [vmem:[%s2986_s15 + $0x100] sm:$0xff] (%p2464_p5), %v1946_v2  ;;  %v1964_v34 = vld [vmem:[%s2813_s12 + $0x88] sm:$0xff] (%p2464_p5)  ;;  %v1966_v35 = vld [vmem:[%s2813_s12 + $0x90] sm:$0xff] (%p2464_p5) }
 0x1e3   : > { %v2237_v62 = vpack.c.bf16 %v1545_v42, %v1544_v40  ;;  %v1462_v53 = vadd.f32 %v1461_v22, %v2861_v16  ;;  %v2240_v54 = vpack.c.bf16 %v1551_v47, %v1550_v25  ;;  %v1375_v56 = vadd.f32 %v1374_v52, %v2870_v31  ;;  %1949 = vst [vmem:[%s2986_s15 + $0x108] sm:$0xff] (%p2464_p5), %v1948_v27  ;;  %v1968_v45 = vld [vmem:[%s2813_s12 + $0x98] sm:$0xff] (%p2464_p5)  ;;  %v1970_v37 = vld [vmem:[%s2813_s12 + $0xa0] sm:$0xff] (%p2464_p5)  ;;  %v1972_v38 = vld [vmem:[%s2813_s12 + $0xa8] sm:$0xff] (%p2464_p5) }
 0x1e4   : > { %v1465_v43 = vpop.f32.mrf.mxu1  ;;  %v1376_v60 = vpop.f32.mrf.mxu0  ;;  %v1552_v20 = vmax.f32 %v1460_v44, 0.0  ;;  %v1558_v41 = vmax.f32 %v1373_v50, 0.0  ;;  %1951 = vst [vmem:[%s2986_s15 + $0x110] sm:$0xff] (%p2464_p5), %v1950_v48  ;;  %1953 = vst [vmem:[%s2986_s15 + $0x118] sm:$0xff] (%p2464_p5), %v1952_v36  ;;  %v1974_v39 = vld [vmem:[%s2813_s12 + $0xb0] sm:$0xff] (%p2464_p5)  ;;  %v1976_v46 = vld [vmem:[%s2813_s12 + $0xb8] sm:$0xff] (%p2464_p5) }
 0x1e5   : > { %1893 = vst [vmem:[%s2813_s12 + $0x118] sm:$0xff] %v2237_v62  ;;  %v1553_v57 = vmax.f32 %v1462_v53, 0.0  ;;  %v1466_v58 = vadd.f32 %v1465_v43, %v2870_v31  ;;  %1896 = vst [vmem:[%s2813_s12 + $0x130] sm:$0xff] %v2240_v54  ;;  %v1559_v63 = vmax.f32 %v1375_v56, 0.0  ;;  %v1377_v4 = vadd.f32 %v1376_v60, %v2879_v55  ;;  %v1978_v59 = vld [vmem:[%s2813_s12 + $0xc0] sm:$0xff] (%p2464_p5)  ;;  %v1980_v40 = vld [vmem:[%s2813_s12 + $0xc8] sm:$0xff] (%p2464_p5) }
 0x1e6   : > { %v1467_v1 = vpop.f32.mrf.mxu1  ;;  %v1378_v51 = vpop.f32.mrf.mxu0  ;;  %1955 = vst [vmem:[%s2986_s15 + $0x180] sm:$0xff] (%p2464_p5), %v1954_v29  ;;  %1957 = vst [vmem:[%s2986_s15 + $0x188] sm:$0xff] (%p2464_p5), %v1956_v30  ;;  %v1982_v42 = vld [vmem:[%s2813_s12 + $0xd0] sm:$0xff] (%p2464_p5)  ;;  %v1984_v44 = vld [vmem:[%s2813_s12 + $0xd8] sm:$0xff] (%p2464_p5) }
 0x1e7   : > { %v2241_v16 = vpack.c.bf16 %v1553_v57, %v1552_v20  ;;  %v1468_v49 = vadd.f32 %v1467_v1, %v2870_v31  ;;  %v2244_v5 = vpack.c.bf16 %v1559_v63, %v1558_v41  ;;  %v1379_v7 = vadd.f32 %v1378_v51, %v2879_v55  ;;  %1959 = vst [vmem:[%s2986_s15 + $0x190] sm:$0xff] (%p2464_p5), %v1958_v32  ;;  %v1986_v25 = vld [vmem:[%s2813_s12 + $0xe0] sm:$0xff] (%p2464_p5)  ;;  %v1988_v47 = vld [vmem:[%s2813_s12 + $0xe8] sm:$0xff] (%p2464_p5)  ;;  %v1990_v22 = vld [vmem:[%s2813_s12 + $0xf0] sm:$0xff] (%p2464_p5) }
 0x1e8   : > { %v1469_v6 = vpop.f32.mrf.mxu1  ;;  %v1560_v8 = vmax.f32 %v1466_v58, 0.0  ;;  %v1566_v26 = vmax.f32 %v1377_v4, 0.0  ;;  %1961 = vst [vmem:[%s2986_s15 + $0x198] sm:$0xff] (%p2464_p5), %v1960_v33  ;;  %1963 = vst [vmem:[%s2986_s15 + $0x200] sm:$0xff] (%p2464_p5), %v1962_v61  ;;  %v1992_v50 = vld [vmem:[%s2813_s12 + $0xf8] sm:$0xff] (%p2464_p5)  ;;  %v1994_v52 = vld [vmem:[%s2813_s12 + $0x100] sm:$0xff] (%p2464_p5) }
 0x1e9   : > { %1897 = vst [vmem:[%s2813_s12 + $0x138] sm:$0xff] %v2241_v16  ;;  %v1561_v13 = vmax.f32 %v1468_v49, 0.0  ;;  %v1470_v3 = vadd.f32 %v1469_v6, %v2879_v55  ;;  %1900 = vst [vmem:[%s2813_s12 + $0x150] sm:$0xff] %v2244_v5  ;;  %v1567_v9 = vmax.f32 %v1379_v7, 0.0  ;;  %v1996_v62 = vld [vmem:[%s2813_s12 + $0x108] sm:$0xff] (%p2464_p5)  ;;  %v1998_v53 = vld [vmem:[%s2813_s12 + $0x110] sm:$0xff] (%p2464_p5) }
 0x1ea   : > { %v1471_v0 = vpop.f32.mrf.mxu1  ;;  %1965 = vst [vmem:[%s2986_s15 + $0x208] sm:$0xff] (%p2464_p5), %v1964_v34  ;;  %1967 = vst [vmem:[%s2986_s15 + $0x210] sm:$0xff] (%p2464_p5), %v1966_v35  ;;  %v2002_v43 = vld [vmem:[%s2813_s12 + $0x120] sm:$0xff] (%p2464_p5)  ;;  %v2004_v56 = vld [vmem:[%s2813_s12 + $0x128] sm:$0xff] (%p2464_p5) }
 0x1eb   : > { %v2245_v10 = vpack.c.bf16 %v1561_v13, %v1560_v8  ;;  %v1472_v11 = vadd.f32 %v1471_v0, %v2879_v55  ;;  %v2248_v15 = vpack.c.bf16 %v1567_v9, %v1566_v26  ;;  %v1568_v31 = vmax.f32 %v1470_v3, 0.0  ;;  %v1930_v55 = vld [vmem:[%s2813_s12] sm:$0xff] (%p2464_p5)  ;;  %1969 = vst [vmem:[%s2986_s15 + $0x218] sm:$0xff] (%p2464_p5), %v1968_v45  ;;  %1971 = vst [vmem:[%s2986_s15 + $0x280] sm:$0xff] (%p2464_p5), %v1970_v37  ;;  %v2012_v58 = vld [vmem:[%s2813_s12 + $0x148] sm:$0xff] (%p2464_p5) }
 0x1ec   : > { %1931 = vst [vmem:[%s2986_s15] sm:$0xff] (%p2464_p5), %v1930_v55  ;;  %1973 = vst [vmem:[%s2986_s15 + $0x288] sm:$0xff] (%p2464_p5), %v1972_v38  ;;  %v2000_v54 = vld [vmem:[%s2813_s12 + $0x118] sm:$0xff] (%p2464_p5)  ;;  %v2006_v60 = vld [vmem:[%s2813_s12 + $0x130] sm:$0xff] (%p2464_p5) }
 0x1ed   : > { %1901 = vst [vmem:[%s2813_s12 + $0x158] sm:$0xff] %v2245_v10  ;;  %v1569_v17 = vmax.f32 %v1472_v11, 0.0  ;;  %1904 = vst [vmem:[%s2813_s12 + $0x170] sm:$0xff] %v2248_v15  ;;  %1912 = sbr.rel (!%p2464_p5) target bundleno = 508 (0x1fc), region = 36  ;;  %v2010_v57 = vld [vmem:[%s2813_s12 + $0x140] sm:$0xff] (%p2464_p5)  ;;  %v2020_v4 = vld [vmem:[%s2813_s12 + $0x168] sm:$0xff] (%p2464_p5) }
 0x1ee   : > { %1975 = vst [vmem:[%s2986_s15 + $0x290] sm:$0xff] (%p2464_p5), %v1974_v39  ;;  %1977 = vst [vmem:[%s2986_s15 + $0x298] sm:$0xff] (%p2464_p5), %v1976_v46  ;;  %v2018_v1 = vld [vmem:[%s2813_s12 + $0x160] sm:$0xff] (%p2464_p5) }
 0x1ef   : > { %v2249_v14 = vpack.c.bf16 %v1569_v17, %v1568_v31  ;;  %1979 = vst [vmem:[%s2986_s15 + $0x300] sm:$0xff] (%p2464_p5), %v1978_v59  ;;  %1981 = vst [vmem:[%s2986_s15 + $0x308] sm:$0xff] (%p2464_p5), %v1980_v40 }
 0x1f0   : > { %1983 = vst [vmem:[%s2986_s15 + $0x310] sm:$0xff] (%p2464_p5), %v1982_v42  ;;  %1985 = vst [vmem:[%s2986_s15 + $0x318] sm:$0xff] (%p2464_p5), %v1984_v44  ;;  %v2008_v20 = vld [vmem:[%s2813_s12 + $0x138] sm:$0xff] (%p2464_p5)  ;;  %v2014_v41 = vld [vmem:[%s2813_s12 + $0x150] sm:$0xff] (%p2464_p5) }
 0x1f1   : > { %1905 = vst [vmem:[%s2813_s12 + $0x178] sm:$0xff] %v2249_v14  ;;  %1987 = vst [vmem:[%s2986_s15 + $0x380] sm:$0xff] (%p2464_p5), %v1986_v25 }
 0x1f2   : > { %1989 = vst [vmem:[%s2986_s15 + $0x388] sm:$0xff] %v1988_v47  ;;  %1991 = vst [vmem:[%s2986_s15 + $0x390] sm:$0xff] %v1990_v22 }
 0x1f3   : > { %1993 = vst [vmem:[%s2986_s15 + $0x398] sm:$0xff] %v1992_v50  ;;  %1995 = vst [vmem:[%s2986_s15 + $0x400] sm:$0xff] %v1994_v52 }
 0x1f4   : > { %1997 = vst [vmem:[%s2986_s15 + $0x408] sm:$0xff] %v1996_v62  ;;  %1999 = vst [vmem:[%s2986_s15 + $0x410] sm:$0xff] %v1998_v53  ;;  %v2016_v63 = vld [vmem:[%s2813_s12 + $0x158] sm:$0xff]  ;;  %v2022_v51 = vld [vmem:[%s2813_s12 + $0x170] sm:$0xff] }
 0x1f5   : > { %2001 = vst [vmem:[%s2986_s15 + $0x418] sm:$0xff] %v2000_v54  ;;  %2003 = vst [vmem:[%s2986_s15 + $0x480] sm:$0xff] %v2002_v43 }
 0x1f6   : > { %2005 = vst [vmem:[%s2986_s15 + $0x488] sm:$0xff] %v2004_v56  ;;  %2007 = vst [vmem:[%s2986_s15 + $0x490] sm:$0xff] %v2006_v60 }
 0x1f7   : > { %2009 = vst [vmem:[%s2986_s15 + $0x498] sm:$0xff] %v2008_v20  ;;  %2011 = vst [vmem:[%s2986_s15 + $0x500] sm:$0xff] %v2010_v57 }
 0x1f8   : > { %2013 = vst [vmem:[%s2986_s15 + $0x508] sm:$0xff] %v2012_v58  ;;  %2015 = vst [vmem:[%s2986_s15 + $0x510] sm:$0xff] %v2014_v41  ;;  %v2024_v16 = vld [vmem:[%s2813_s12 + $0x178] sm:$0xff] }
 0x1f9   : > { %2017 = vst [vmem:[%s2986_s15 + $0x518] sm:$0xff] %v2016_v63  ;;  %2019 = vst [vmem:[%s2986_s15 + $0x580] sm:$0xff] %v2018_v1 }
 0x1fa   : > { %2021 = vst [vmem:[%s2986_s15 + $0x588] sm:$0xff] %v2020_v4  ;;  %2023 = vst [vmem:[%s2986_s15 + $0x590] sm:$0xff] %v2022_v51 }
 0x1fb   : > { %2025 = vst [vmem:[%s2986_s15 + $0x598] sm:$0xff] %v2024_v16 }
 0x1fc PF: > { %s13_s18 = sadd.s32 1, %s2387_s18   ;;  %s3098_s12 = smov %s2367_s13 }
 0x1fd   : > { %p10_p11 = scmp.ge.s32.totalorder %s13_s18, 10   ;;  %s3099_s13 = smov %s2475_s27 }
 0x1fe   : > { %s3100_s14 = smov %s2379_s16  ;;  %s3101_s15 = smov %s2383_s17 }
 0x1ff   : > { %s3102_s16 = smov %s3105_s19  ;;  %s3103_s17 = smov %s3109_s20 }
 0x200   :  { %12 = sbr.rel (!%p10_p11) target bundleno = 4 (0x4), region = 85 }

</bundles_post_ra>
